<compile_context>
chip_gen: v5e
topology: v5e:2x2
jax: 0.10.0
libtpu: 0.0.40
codegen_flags: <defaults>
</compile_context>

<pallas_src>
import math

import jax
import jax.numpy as jnp
from jax.experimental import pallas as pl
from jax.experimental.pallas import tpu as pltpu

# ----------------------------- config (small, synthetic) ---------------------
VOCAB = 100
HIDDEN = 32
SEQ = 8
BATCH = 2
N_LAYERS = 2
N_HEADS = 2
HEAD_DIM = HIDDEN // N_HEADS
INTERMEDIATE = 64
MAX_POS = 16
TYPE_VOCAB = 2
NUM_FILTERS = 128
KERNEL_SIZES = (2, 3, 4)
MAX_K = max(KERNEL_SIZES)
NUM_LABELS = 3
LN_EPS = 1e-12
LANE = 128  # lane-padded classifier output width


# ----------------------------- in-kernel math helpers -------------------------
def _layer_norm(x, g, b, eps=LN_EPS):
    mu = jnp.mean(x, axis=-1, keepdims=True)
    var = jnp.mean((x - mu) ** 2, axis=-1, keepdims=True)
    return (x - mu) * jax.lax.rsqrt(var + eps) * g + b


def _gelu_tanh(x):
    # tanh-approx GELU: one EUP tanh + a few VALU ops (vs ~12-op erf poly).
    c = math.sqrt(2.0 / math.pi)
    return 0.5 * x * (1.0 + jnp.tanh(c * (x + 0.044715 * x * x * x)))


# ----------------------------- fused forward kernel ---------------------------
def _fused_kernel(emb_ref, mask_ref, cvalid_ref,
                  emb_ln_g_ref, emb_ln_b_ref,
                  wqkv_ref, bqkv_ref, wo_ref, bo_ref,
                  ln1_g_ref, ln1_b_ref,
                  w1_ref, b1_ref, w2_ref, b2_ref,
                  ln2_g_ref, ln2_b_ref,
                  wconv_ref, bconv_ref,
                  wcls_ref, bcls_ref,
                  out_ref):
    BS = BATCH * SEQ                       # folded batch rows
    H, dh = HIDDEN, HEAD_DIM
    scale = 1.0 / math.sqrt(dh)

    # ---- embeddings LayerNorm (embedding gather + sum done outside) ----
    x = _layer_norm(emb_ref[...], emb_ln_g_ref[...], emb_ln_b_ref[...])   # [BS,H]
    add_mask = mask_ref[...]               # [T,T] block-diag additive mask

    # ---- BERT encoder layers (unrolled; weights VMEM-resident, bf16 at MXU) --
    for l in range(N_LAYERS):
        qkv = jnp.dot(x.astype(jnp.bfloat16), wqkv_ref[l],
                      preferred_element_type=jnp.float32) + bqkv_ref[l]   # [BS,3H]

        # Stack heads along rows -> [T, dh], row-block order (head, batch).
        q = jnp.concatenate(
            [qkv[:, h * dh:(h + 1) * dh] for h in range(N_HEADS)], axis=0)
        k = jnp.concatenate(
            [qkv[:, H + h * dh:H + (h + 1) * dh] for h in range(N_HEADS)], axis=0)
        v = jnp.concatenate(
            [qkv[:, 2 * H + h * dh:2 * H + (h + 1) * dh] for h in range(N_HEADS)],
            axis=0)

        # One scores matmul for all (head, batch) blocks; the additive mask is
        # -1e4 off-block (and at padded key positions), so the single softmax
        # reduces to the per-(head,batch) softmax exactly (exp underflows to 0).
        s = jax.lax.dot_general(
            q.astype(jnp.bfloat16), k.astype(jnp.bfloat16),
            (((1,), (1,)), ((), ())),
            preferred_element_type=jnp.float32) * scale                   # [T,T]
        s = s + add_mask
        s = s - jnp.max(s, axis=-1, keepdims=True)
        p = jnp.exp(s)
        p = p * pl.reciprocal(jnp.sum(p, axis=-1, keepdims=True), approx=True)

        ctx_stack = jnp.dot(p.astype(jnp.bfloat16), v.astype(jnp.bfloat16),
                            preferred_element_type=jnp.float32)           # [T,dh]
        ctx = jnp.concatenate(
            [ctx_stack[h * BS:(h + 1) * BS, :] for h in range(N_HEADS)],
            axis=1)                                                       # [BS,H]

        attn_out = jnp.dot(ctx.astype(jnp.bfloat16), wo_ref[l],
                           preferred_element_type=jnp.float32) + bo_ref[l]
        hid = _layer_norm(x + attn_out, ln1_g_ref[l], ln1_b_ref[l])

        inter = _gelu_tanh(
            jnp.dot(hid.astype(jnp.bfloat16), w1_ref[l],
                    preferred_element_type=jnp.float32) + b1_ref[l])      # [BS,I]
        ffn = jnp.dot(inter.astype(jnp.bfloat16), w2_ref[l],
                      preferred_element_type=jnp.float32) + b2_ref[l]
        x = _layer_norm(hid + ffn, ln2_g_ref[l], ln2_b_ref[l])            # [BS,H]

    # ---- textCNN head: ONE fused conv matmul over a shifted-window slab ----
    # slab column block i holds rows x[s+i]; windows that run past the end of a
    # sequence produce garbage rows whose conv outputs are zeroed below.
    def shift_rows(a, i):
        if i == 0:
            return a
        return jnp.concatenate(
            [a[i:, :], jnp.zeros((i, a.shape[1]), a.dtype)], axis=0)

    slab = jnp.concatenate([shift_rows(x, i) for i in range(MAX_K)],
                           axis=1)                                        # [BS,4H]
    act = jnp.dot(slab.astype(jnp.bfloat16), wconv_ref[...],
                  preferred_element_type=jnp.float32) + bconv_ref[...]    # [BS,3F]
    # ReLU, then zero the invalid tail rows per kernel-size block
    # (exact, since ReLU outputs are >= 0) before the max-pool.
    act = jnp.maximum(act, 0.0) * cvalid_ref[...]

    feats = [jnp.max(act[b * SEQ:(b + 1) * SEQ, :], axis=0, keepdims=True)
             for b in range(BATCH)]
    feat = jnp.concatenate(feats, axis=0)                                 # [B,3F]

    logits = jnp.dot(feat.astype(jnp.bfloat16), wcls_ref[...],
                     preferred_element_type=jnp.float32) + bcls_ref[...]  # [B,LANE]
    out_ref[...] = logits


# ----------------------------- wrapper -----------------------------------------
def forward(params, input_ids, attention_mask, token_type_ids):
    B, S = input_ids.shape
    T = N_HEADS * B * S

    # Embedding gather stays as one XLA gather (data-dependent index).
    pos_ids = jnp.arange(S)
    emb = (params["word_emb"][input_ids]
           + params["pos_emb"][pos_ids][None, :, :]
           + params["type_emb"][token_type_ids])                          # [B,S,H]
    emb = emb.reshape(B * S, HIDDEN)

    # Block-diagonal additive attention mask over (head, batch) row blocks:
    # same block -> BERT additive key mask; different block -> -1e4.
    add = (1.0 - attention_mask.astype(jnp.float32)) * -10000.0           # [B,S]
    idx = jnp.arange(T)
    blk = idx // S                                   # (head*B + batch) block id
    col_add = add[blk % B, idx % S]                  # [T] per-key-column mask
    mask_big = jnp.where(blk[:, None] == blk[None, :],
                         col_add[None, :], -10000.0)                      # [T,T]

    # Conv-row validity: conv of kernel size k has S-k+1 valid output rows.
    s_rows = jnp.arange(B * S) % S
    thr = jnp.repeat(jnp.array([S - k for k in KERNEL_SIZES], jnp.int32),
                     NUM_FILTERS)
    conv_valid = (s_rows[:, None] <= thr[None, :]).astype(jnp.float32)    # [B*S,3F]

    args = [
        emb, mask_big, conv_valid,
        params["emb_ln_g"], params["emb_ln_b"],
        params["wqkv"], params["bqkv"], params["wo"], params["bo"],
        params["ln1_g"], params["ln1_b"],
        params["w1"], params["b1"], params["w2"], params["b2"],
        params["ln2_g"], params["ln2_b"],
        params["conv_w"], params["conv_b"],
        params["cls_w_pad"], params["cls_b_pad"],
    ]

    vmem = pl.BlockSpec(memory_space=pltpu.MemorySpace.VMEM)
    out = pl.pallas_call(
        _fused_kernel,
        out_shape=jax.ShapeDtypeStruct((B, LANE), jnp.float32),
        in_specs=[vmem] * len(args),
        out_specs=vmem,
    )(*args)
    return out[:, :NUM_LABELS]


# ----------------------------- deterministic init ------------------------------
def init_params(key):
    keys = iter(jax.random.split(key, 64))

    def nrm(shape):
        return jax.random.normal(next(keys), shape, dtype=jnp.float32) * 0.02

    bf16 = jnp.bfloat16
    p = dict(
        word_emb=nrm((VOCAB, HIDDEN)),
        pos_emb=nrm((MAX_POS, HIDDEN)),
        type_emb=nrm((TYPE_VOCAB, HIDDEN)),
        emb_ln_g=jnp.ones((1, HIDDEN), jnp.float32),
        emb_ln_b=jnp.zeros((1, HIDDEN), jnp.float32),
        # Per-layer weights stacked on a leading layer axis; Q/K/V fused.
        # Matmul weights stored bf16 (MXU operands); biases / LN params stay f32.
        wqkv=nrm((N_LAYERS, HIDDEN, 3 * HIDDEN)).astype(bf16),
        bqkv=nrm((N_LAYERS, 1, 3 * HIDDEN)),
        wo=nrm((N_LAYERS, HIDDEN, HIDDEN)).astype(bf16),
        bo=nrm((N_LAYERS, 1, HIDDEN)),
        ln1_g=jnp.ones((N_LAYERS, 1, HIDDEN), jnp.float32),
        ln1_b=jnp.zeros((N_LAYERS, 1, HIDDEN), jnp.float32),
        w1=nrm((N_LAYERS, HIDDEN, INTERMEDIATE)).astype(bf16),
        b1=nrm((N_LAYERS, 1, INTERMEDIATE)),
        w2=nrm((N_LAYERS, INTERMEDIATE, HIDDEN)).astype(bf16),
        b2=nrm((N_LAYERS, 1, HIDDEN)),
        ln2_g=jnp.ones((N_LAYERS, 1, HIDDEN), jnp.float32),
        ln2_b=jnp.zeros((N_LAYERS, 1, HIDDEN), jnp.float32),
    )
    # Conv weight for kernel size k is PyTorch [F, 1, k, H] flattened row-major
    # over (k, H) -> [k*H, F], zero-padded to [MAX_K*H, F] (so shift blocks the
    # conv does not use contribute nothing), then stacked along filters.
    conv_w, conv_b = [], []
    for k in KERNEL_SIZES:
        w = nrm((k * HIDDEN, NUM_FILTERS))
        conv_w.append(jnp.pad(w, ((0, (MAX_K - k) * HIDDEN), (0, 0))))
        conv_b.append(nrm((1, NUM_FILTERS)))
    p["conv_w"] = jnp.concatenate(conv_w, axis=1).astype(bf16)   # [MAX_K*H, 3F]
    p["conv_b"] = jnp.concatenate(conv_b, axis=1)                # [1, 3F]

    cls_w = nrm((NUM_FILTERS * len(KERNEL_SIZES), NUM_LABELS))
    cls_b = nrm((1, NUM_LABELS))
    # Lane-pad the classifier to 128 output columns (zeros) for unmasked stores.
    p["cls_w_pad"] = jnp.pad(
        cls_w, ((0, 0), (0, LANE - NUM_LABELS))).astype(bf16)
    p["cls_b_pad"] = jnp.pad(cls_b, ((0, 0), (0, LANE - NUM_LABELS)))
    return p


# ----------------------------- main --------------------------------------------
if __name__ == "__main__":
    root = jax.random.PRNGKey(0)
    pkey, dkey = jax.random.split(root)
    params = init_params(pkey)

    input_ids = jax.random.randint(
        jax.random.fold_in(dkey, 0), (BATCH, SEQ), 0, VOCAB, dtype=jnp.int32)
    attention_mask = jnp.ones((BATCH, SEQ), jnp.int32).at[1, 6:].set(0)
    token_type_ids = jnp.zeros((BATCH, SEQ), jnp.int32)

    logits = jax.jit(forward)(params, input_ids, attention_mask, token_type_ids)
    jax.block_until_ready(logits)
    assert logits.shape == (BATCH, NUM_LABELS)
    print("KERNEL_OK")
</pallas_src>

<mosaic_0001>
module attributes {stable_mosaic.version = 11 : i64} {
  func.func @_fused_kernel(%arg0: memref<16x32xf32, #tpu.memory_space<vmem>>, %arg1: memref<32x32xf32, #tpu.memory_space<vmem>>, %arg2: memref<16x384xf32, #tpu.memory_space<vmem>>, %arg3: memref<1x32xf32, #tpu.memory_space<vmem>>, %arg4: memref<1x32xf32, #tpu.memory_space<vmem>>, %arg5: memref<2x32x96xbf16, #tpu.memory_space<vmem>>, %arg6: memref<2x1x96xf32, #tpu.memory_space<vmem>>, %arg7: memref<2x32x32xbf16, #tpu.memory_space<vmem>>, %arg8: memref<2x1x32xf32, #tpu.memory_space<vmem>>, %arg9: memref<2x1x32xf32, #tpu.memory_space<vmem>>, %arg10: memref<2x1x32xf32, #tpu.memory_space<vmem>>, %arg11: memref<2x32x64xbf16, #tpu.memory_space<vmem>>, %arg12: memref<2x1x64xf32, #tpu.memory_space<vmem>>, %arg13: memref<2x64x32xbf16, #tpu.memory_space<vmem>>, %arg14: memref<2x1x32xf32, #tpu.memory_space<vmem>>, %arg15: memref<2x1x32xf32, #tpu.memory_space<vmem>>, %arg16: memref<2x1x32xf32, #tpu.memory_space<vmem>>, %arg17: memref<128x384xbf16, #tpu.memory_space<vmem>>, %arg18: memref<1x384xf32, #tpu.memory_space<vmem>>, %arg19: memref<384x128xbf16, #tpu.memory_space<vmem>>, %arg20: memref<1x128xf32, #tpu.memory_space<vmem>>, %arg21: memref<2x128xf32, #tpu.memory_space<vmem>>) attributes {dimension_semantics = [], scalar_prefetch = 0 : i64, scratch_operands = 0 : i64, tpu.core_type = #tpu.core_type<tc>} {
    %c0 = arith.constant 0 : index
    %c0_0 = arith.constant 0 : index
    %0 = vector.load %arg0[%c0, %c0_0] : memref<16x32xf32, #tpu.memory_space<vmem>>, vector<16x32xf32>
    %c0_1 = arith.constant 0 : index
    %c0_2 = arith.constant 0 : index
    %1 = vector.load %arg3[%c0_1, %c0_2] : memref<1x32xf32, #tpu.memory_space<vmem>>, vector<1x32xf32>
    %c0_3 = arith.constant 0 : index
    %c0_4 = arith.constant 0 : index
    %2 = vector.load %arg4[%c0_3, %c0_4] : memref<1x32xf32, #tpu.memory_space<vmem>>, vector<1x32xf32>
    %cst = arith.constant dense<0.000000e+00> : vector<16xf32>
    %3 = vector.multi_reduction <add>, %0, %cst [1] : vector<16x32xf32> to vector<16xf32>
    %4 = vector.shape_cast %3 : vector<16xf32> to vector<16x1xf32>
    %cst_5 = arith.constant 3.200000e+01 : f32
    %5 = vector.broadcast %cst_5 : f32 to vector<16x1xf32>
    %6 = arith.divf %4, %5 : vector<16x1xf32>
    %7 = vector.broadcast %6 : vector<16x1xf32> to vector<16x32xf32>
    %8 = arith.subf %0, %7 : vector<16x32xf32>
    %9 = arith.mulf %8, %8 : vector<16x32xf32>
    %cst_6 = arith.constant dense<0.000000e+00> : vector<16xf32>
    %10 = vector.multi_reduction <add>, %9, %cst_6 [1] : vector<16x32xf32> to vector<16xf32>
    %11 = vector.shape_cast %10 : vector<16xf32> to vector<16x1xf32>
    %cst_7 = arith.constant 3.200000e+01 : f32
    %12 = vector.broadcast %cst_7 : f32 to vector<16x1xf32>
    %13 = arith.divf %11, %12 : vector<16x1xf32>
    %14 = vector.broadcast %6 : vector<16x1xf32> to vector<16x32xf32>
    %15 = arith.subf %0, %14 : vector<16x32xf32>
    %cst_8 = arith.constant 9.99999996E-13 : f32
    %16 = vector.broadcast %cst_8 : f32 to vector<16x1xf32>
    %17 = arith.addf %13, %16 : vector<16x1xf32>
    %18 = math.rsqrt %17 : vector<16x1xf32>
    %19 = vector.broadcast %18 : vector<16x1xf32> to vector<16x32xf32>
    %20 = arith.mulf %15, %19 : vector<16x32xf32>
    %21 = vector.broadcast %1 : vector<1x32xf32> to vector<16x32xf32>
    %22 = arith.mulf %20, %21 : vector<16x32xf32>
    %23 = vector.broadcast %2 : vector<1x32xf32> to vector<16x32xf32>
    %24 = arith.addf %22, %23 : vector<16x32xf32>
    %c0_9 = arith.constant 0 : index
    %c0_10 = arith.constant 0 : index
    %25 = vector.load %arg1[%c0_9, %c0_10] : memref<32x32xf32, #tpu.memory_space<vmem>>, vector<32x32xf32>
    %26 = arith.truncf %24 : vector<16x32xf32> to vector<16x32xbf16>
    %c0_11 = arith.constant 0 : index
    %c0_12 = arith.constant 0 : index
    %c0_13 = arith.constant 0 : index
    %27 = vector.load %arg5[%c0_11, %c0_12, %c0_13] : memref<2x32x96xbf16, #tpu.memory_space<vmem>>, vector<1x32x96xbf16>
    %28 = vector.shape_cast %27 : vector<1x32x96xbf16> to vector<32x96xbf16>
    %cst_14 = arith.constant dense<0.000000e+00> : vector<16x96xf32>
    %29 = tpu.matmul %26, %28, %cst_14 {dimension_numbers = #tpu.dot_dimension_numbers<[1], [0], [0], [1], [0, 0, 1, 1], [], []>} : vector<16x32xbf16>, vector<32x96xbf16>, vector<16x96xf32> -> vector<16x96xf32>
    %c0_15 = arith.constant 0 : index
    %c0_16 = arith.constant 0 : index
    %c0_17 = arith.constant 0 : index
    %30 = vector.load %arg6[%c0_15, %c0_16, %c0_17] : memref<2x1x96xf32, #tpu.memory_space<vmem>>, vector<1x1x96xf32>
    %31 = vector.shape_cast %30 : vector<1x1x96xf32> to vector<1x96xf32>
    %32 = vector.broadcast %31 : vector<1x96xf32> to vector<16x96xf32>
    %33 = arith.addf %29, %32 : vector<16x96xf32>
    %34 = vector.extract_strided_slice %33 {offsets = [0, 0], sizes = [16, 16], strides = [1, 1]} : vector<16x96xf32> to vector<16x16xf32>
    %35 = vector.extract_strided_slice %33 {offsets = [0, 16], sizes = [16, 16], strides = [1, 1]} : vector<16x96xf32> to vector<16x16xf32>
    %36 = tpu.concatenate %34, %35 in 0 : vector<16x16xf32>, vector<16x16xf32> -> vector<32x16xf32>
    %37 = vector.extract_strided_slice %33 {offsets = [0, 32], sizes = [16, 16], strides = [1, 1]} : vector<16x96xf32> to vector<16x16xf32>
    %38 = vector.extract_strided_slice %33 {offsets = [0, 48], sizes = [16, 16], strides = [1, 1]} : vector<16x96xf32> to vector<16x16xf32>
    %39 = tpu.concatenate %37, %38 in 0 : vector<16x16xf32>, vector<16x16xf32> -> vector<32x16xf32>
    %40 = vector.extract_strided_slice %33 {offsets = [0, 64], sizes = [16, 16], strides = [1, 1]} : vector<16x96xf32> to vector<16x16xf32>
    %41 = vector.extract_strided_slice %33 {offsets = [0, 80], sizes = [16, 16], strides = [1, 1]} : vector<16x96xf32> to vector<16x16xf32>
    %42 = tpu.concatenate %40, %41 in 0 : vector<16x16xf32>, vector<16x16xf32> -> vector<32x16xf32>
    %43 = arith.truncf %36 : vector<32x16xf32> to vector<32x16xbf16>
    %44 = arith.truncf %39 : vector<32x16xf32> to vector<32x16xbf16>
    %cst_18 = arith.constant dense<0.000000e+00> : vector<32x32xf32>
    %45 = tpu.matmul %43, %44, %cst_18 {dimension_numbers = #tpu.dot_dimension_numbers<[1], [1], [0], [0], [0, 0, 1, 0], [], []>} : vector<32x16xbf16>, vector<32x16xbf16>, vector<32x32xf32> -> vector<32x32xf32>
    %cst_19 = arith.constant 2.500000e-01 : f32
    %46 = vector.broadcast %cst_19 : f32 to vector<32x32xf32>
    %47 = arith.mulf %45, %46 : vector<32x32xf32>
    %48 = arith.addf %47, %25 : vector<32x32xf32>
    %cst_20 = arith.constant dense<0xFF800000> : vector<32xf32>
    %49 = vector.multi_reduction <maximumf>, %48, %cst_20 [1] : vector<32x32xf32> to vector<32xf32>
    %50 = vector.shape_cast %49 : vector<32xf32> to vector<32x1xf32>
    %51 = vector.broadcast %50 : vector<32x1xf32> to vector<32x32xf32>
    %52 = arith.subf %48, %51 : vector<32x32xf32>
    %53 = math.exp %52 : vector<32x32xf32>
    %cst_21 = arith.constant dense<0.000000e+00> : vector<32xf32>
    %54 = vector.multi_reduction <add>, %53, %cst_21 [1] : vector<32x32xf32> to vector<32xf32>
    %55 = vector.shape_cast %54 : vector<32xf32> to vector<32x1xf32>
    %56 = tpu.reciprocal %55 {approx = true} : vector<32x1xf32> -> vector<32x1xf32>
    %57 = vector.broadcast %56 : vector<32x1xf32> to vector<32x32xf32>
    %58 = arith.mulf %53, %57 : vector<32x32xf32>
    %59 = arith.truncf %58 : vector<32x32xf32> to vector<32x32xbf16>
    %60 = arith.truncf %42 : vector<32x16xf32> to vector<32x16xbf16>
    %cst_22 = arith.constant dense<0.000000e+00> : vector<32x16xf32>
    %61 = tpu.matmul %59, %60, %cst_22 {dimension_numbers = #tpu.dot_dimension_numbers<[1], [0], [0], [1], [0, 0, 1, 1], [], []>} : vector<32x32xbf16>, vector<32x16xbf16>, vector<32x16xf32> -> vector<32x16xf32>
    %62 = vector.extract_strided_slice %61 {offsets = [0, 0], sizes = [16, 16], strides = [1, 1]} : vector<32x16xf32> to vector<16x16xf32>
    %63 = vector.extract_strided_slice %61 {offsets = [16, 0], sizes = [16, 16], strides = [1, 1]} : vector<32x16xf32> to vector<16x16xf32>
    %64 = tpu.concatenate %62, %63 in 1 : vector<16x16xf32>, vector<16x16xf32> -> vector<16x32xf32>
    %65 = arith.truncf %64 : vector<16x32xf32> to vector<16x32xbf16>
    %c0_23 = arith.constant 0 : index
    %c0_24 = arith.constant 0 : index
    %c0_25 = arith.constant 0 : index
    %66 = vector.load %arg7[%c0_23, %c0_24, %c0_25] : memref<2x32x32xbf16, #tpu.memory_space<vmem>>, vector<1x32x32xbf16>
    %67 = vector.shape_cast %66 : vector<1x32x32xbf16> to vector<32x32xbf16>
    %cst_26 = arith.constant dense<0.000000e+00> : vector<16x32xf32>
    %68 = tpu.matmul %65, %67, %cst_26 {dimension_numbers = #tpu.dot_dimension_numbers<[1], [0], [0], [1], [0, 0, 1, 1], [], []>} : vector<16x32xbf16>, vector<32x32xbf16>, vector<16x32xf32> -> vector<16x32xf32>
    %c0_27 = arith.constant 0 : index
    %c0_28 = arith.constant 0 : index
    %c0_29 = arith.constant 0 : index
    %69 = vector.load %arg8[%c0_27, %c0_28, %c0_29] : memref<2x1x32xf32, #tpu.memory_space<vmem>>, vector<1x1x32xf32>
    %70 = vector.shape_cast %69 : vector<1x1x32xf32> to vector<1x32xf32>
    %71 = vector.broadcast %70 : vector<1x32xf32> to vector<16x32xf32>
    %72 = arith.addf %68, %71 : vector<16x32xf32>
    %73 = arith.addf %24, %72 : vector<16x32xf32>
    %c0_30 = arith.constant 0 : index
    %c0_31 = arith.constant 0 : index
    %c0_32 = arith.constant 0 : index
    %74 = vector.load %arg9[%c0_30, %c0_31, %c0_32] : memref<2x1x32xf32, #tpu.memory_space<vmem>>, vector<1x1x32xf32>
    %75 = vector.shape_cast %74 : vector<1x1x32xf32> to vector<1x32xf32>
    %c0_33 = arith.constant 0 : index
    %c0_34 = arith.constant 0 : index
    %c0_35 = arith.constant 0 : index
    %76 = vector.load %arg10[%c0_33, %c0_34, %c0_35] : memref<2x1x32xf32, #tpu.memory_space<vmem>>, vector<1x1x32xf32>
    %77 = vector.shape_cast %76 : vector<1x1x32xf32> to vector<1x32xf32>
    %cst_36 = arith.constant dense<0.000000e+00> : vector<16xf32>
    %78 = vector.multi_reduction <add>, %73, %cst_36 [1] : vector<16x32xf32> to vector<16xf32>
    %79 = vector.shape_cast %78 : vector<16xf32> to vector<16x1xf32>
    %cst_37 = arith.constant 3.200000e+01 : f32
    %80 = vector.broadcast %cst_37 : f32 to vector<16x1xf32>
    %81 = arith.divf %79, %80 : vector<16x1xf32>
    %82 = vector.broadcast %81 : vector<16x1xf32> to vector<16x32xf32>
    %83 = arith.subf %73, %82 : vector<16x32xf32>
    %84 = arith.mulf %83, %83 : vector<16x32xf32>
    %cst_38 = arith.constant dense<0.000000e+00> : vector<16xf32>
    %85 = vector.multi_reduction <add>, %84, %cst_38 [1] : vector<16x32xf32> to vector<16xf32>
    %86 = vector.shape_cast %85 : vector<16xf32> to vector<16x1xf32>
    %cst_39 = arith.constant 3.200000e+01 : f32
    %87 = vector.broadcast %cst_39 : f32 to vector<16x1xf32>
    %88 = arith.divf %86, %87 : vector<16x1xf32>
    %89 = vector.broadcast %81 : vector<16x1xf32> to vector<16x32xf32>
    %90 = arith.subf %73, %89 : vector<16x32xf32>
    %cst_40 = arith.constant 9.99999996E-13 : f32
    %91 = vector.broadcast %cst_40 : f32 to vector<16x1xf32>
    %92 = arith.addf %88, %91 : vector<16x1xf32>
    %93 = math.rsqrt %92 : vector<16x1xf32>
    %94 = vector.broadcast %93 : vector<16x1xf32> to vector<16x32xf32>
    %95 = arith.mulf %90, %94 : vector<16x32xf32>
    %96 = vector.broadcast %75 : vector<1x32xf32> to vector<16x32xf32>
    %97 = arith.mulf %95, %96 : vector<16x32xf32>
    %98 = vector.broadcast %77 : vector<1x32xf32> to vector<16x32xf32>
    %99 = arith.addf %97, %98 : vector<16x32xf32>
    %100 = arith.truncf %99 : vector<16x32xf32> to vector<16x32xbf16>
    %c0_41 = arith.constant 0 : index
    %c0_42 = arith.constant 0 : index
    %c0_43 = arith.constant 0 : index
    %101 = vector.load %arg11[%c0_41, %c0_42, %c0_43] : memref<2x32x64xbf16, #tpu.memory_space<vmem>>, vector<1x32x64xbf16>
    %102 = vector.shape_cast %101 : vector<1x32x64xbf16> to vector<32x64xbf16>
    %cst_44 = arith.constant dense<0.000000e+00> : vector<16x64xf32>
    %103 = tpu.matmul %100, %102, %cst_44 {dimension_numbers = #tpu.dot_dimension_numbers<[1], [0], [0], [1], [0, 0, 1, 1], [], []>} : vector<16x32xbf16>, vector<32x64xbf16>, vector<16x64xf32> -> vector<16x64xf32>
    %c0_45 = arith.constant 0 : index
    %c0_46 = arith.constant 0 : index
    %c0_47 = arith.constant 0 : index
    %104 = vector.load %arg12[%c0_45, %c0_46, %c0_47] : memref<2x1x64xf32, #tpu.memory_space<vmem>>, vector<1x1x64xf32>
    %105 = vector.shape_cast %104 : vector<1x1x64xf32> to vector<1x64xf32>
    %106 = vector.broadcast %105 : vector<1x64xf32> to vector<16x64xf32>
    %107 = arith.addf %103, %106 : vector<16x64xf32>
    %cst_48 = arith.constant 5.000000e-01 : f32
    %108 = vector.broadcast %cst_48 : f32 to vector<16x64xf32>
    %109 = arith.mulf %108, %107 : vector<16x64xf32>
    %cst_49 = arith.constant 4.471500e-02 : f32
    %110 = vector.broadcast %cst_49 : f32 to vector<16x64xf32>
    %111 = arith.mulf %110, %107 : vector<16x64xf32>
    %112 = arith.mulf %111, %107 : vector<16x64xf32>
    %113 = arith.mulf %112, %107 : vector<16x64xf32>
    %114 = arith.addf %107, %113 : vector<16x64xf32>
    %cst_50 = arith.constant 0.797884583 : f32
    %115 = vector.broadcast %cst_50 : f32 to vector<16x64xf32>
    %116 = arith.mulf %115, %114 : vector<16x64xf32>
    %117 = math.tanh %116 : vector<16x64xf32>
    %cst_51 = arith.constant 1.000000e+00 : f32
    %118 = vector.broadcast %cst_51 : f32 to vector<16x64xf32>
    %119 = arith.addf %118, %117 : vector<16x64xf32>
    %120 = arith.mulf %109, %119 : vector<16x64xf32>
    %121 = arith.truncf %120 : vector<16x64xf32> to vector<16x64xbf16>
    %c0_52 = arith.constant 0 : index
    %c0_53 = arith.constant 0 : index
    %c0_54 = arith.constant 0 : index
    %122 = vector.load %arg13[%c0_52, %c0_53, %c0_54] : memref<2x64x32xbf16, #tpu.memory_space<vmem>>, vector<1x64x32xbf16>
    %123 = vector.shape_cast %122 : vector<1x64x32xbf16> to vector<64x32xbf16>
    %cst_55 = arith.constant dense<0.000000e+00> : vector<16x32xf32>
    %124 = tpu.matmul %121, %123, %cst_55 {dimension_numbers = #tpu.dot_dimension_numbers<[1], [0], [0], [1], [0, 0, 1, 1], [], []>} : vector<16x64xbf16>, vector<64x32xbf16>, vector<16x32xf32> -> vector<16x32xf32>
    %c0_56 = arith.constant 0 : index
    %c0_57 = arith.constant 0 : index
    %c0_58 = arith.constant 0 : index
    %125 = vector.load %arg14[%c0_56, %c0_57, %c0_58] : memref<2x1x32xf32, #tpu.memory_space<vmem>>, vector<1x1x32xf32>
    %126 = vector.shape_cast %125 : vector<1x1x32xf32> to vector<1x32xf32>
    %127 = vector.broadcast %126 : vector<1x32xf32> to vector<16x32xf32>
    %128 = arith.addf %124, %127 : vector<16x32xf32>
    %129 = arith.addf %99, %128 : vector<16x32xf32>
    %c0_59 = arith.constant 0 : index
    %c0_60 = arith.constant 0 : index
    %c0_61 = arith.constant 0 : index
    %130 = vector.load %arg15[%c0_59, %c0_60, %c0_61] : memref<2x1x32xf32, #tpu.memory_space<vmem>>, vector<1x1x32xf32>
    %131 = vector.shape_cast %130 : vector<1x1x32xf32> to vector<1x32xf32>
    %c0_62 = arith.constant 0 : index
    %c0_63 = arith.constant 0 : index
    %c0_64 = arith.constant 0 : index
    %132 = vector.load %arg16[%c0_62, %c0_63, %c0_64] : memref<2x1x32xf32, #tpu.memory_space<vmem>>, vector<1x1x32xf32>
    %133 = vector.shape_cast %132 : vector<1x1x32xf32> to vector<1x32xf32>
    %cst_65 = arith.constant dense<0.000000e+00> : vector<16xf32>
    %134 = vector.multi_reduction <add>, %129, %cst_65 [1] : vector<16x32xf32> to vector<16xf32>
    %135 = vector.shape_cast %134 : vector<16xf32> to vector<16x1xf32>
    %cst_66 = arith.constant 3.200000e+01 : f32
    %136 = vector.broadcast %cst_66 : f32 to vector<16x1xf32>
    %137 = arith.divf %135, %136 : vector<16x1xf32>
    %138 = vector.broadcast %137 : vector<16x1xf32> to vector<16x32xf32>
    %139 = arith.subf %129, %138 : vector<16x32xf32>
    %140 = arith.mulf %139, %139 : vector<16x32xf32>
    %cst_67 = arith.constant dense<0.000000e+00> : vector<16xf32>
    %141 = vector.multi_reduction <add>, %140, %cst_67 [1] : vector<16x32xf32> to vector<16xf32>
    %142 = vector.shape_cast %141 : vector<16xf32> to vector<16x1xf32>
    %cst_68 = arith.constant 3.200000e+01 : f32
    %143 = vector.broadcast %cst_68 : f32 to vector<16x1xf32>
    %144 = arith.divf %142, %143 : vector<16x1xf32>
    %145 = vector.broadcast %137 : vector<16x1xf32> to vector<16x32xf32>
    %146 = arith.subf %129, %145 : vector<16x32xf32>
    %cst_69 = arith.constant 9.99999996E-13 : f32
    %147 = vector.broadcast %cst_69 : f32 to vector<16x1xf32>
    %148 = arith.addf %144, %147 : vector<16x1xf32>
    %149 = math.rsqrt %148 : vector<16x1xf32>
    %150 = vector.broadcast %149 : vector<16x1xf32> to vector<16x32xf32>
    %151 = arith.mulf %146, %150 : vector<16x32xf32>
    %152 = vector.broadcast %131 : vector<1x32xf32> to vector<16x32xf32>
    %153 = arith.mulf %151, %152 : vector<16x32xf32>
    %154 = vector.broadcast %133 : vector<1x32xf32> to vector<16x32xf32>
    %155 = arith.addf %153, %154 : vector<16x32xf32>
    %156 = arith.truncf %155 : vector<16x32xf32> to vector<16x32xbf16>
    %c1 = arith.constant 1 : index
    %c0_70 = arith.constant 0 : index
    %c0_71 = arith.constant 0 : index
    %157 = vector.load %arg5[%c1, %c0_70, %c0_71] : memref<2x32x96xbf16, #tpu.memory_space<vmem>>, vector<1x32x96xbf16>
    %158 = vector.shape_cast %157 : vector<1x32x96xbf16> to vector<32x96xbf16>
    %cst_72 = arith.constant dense<0.000000e+00> : vector<16x96xf32>
    %159 = tpu.matmul %156, %158, %cst_72 {dimension_numbers = #tpu.dot_dimension_numbers<[1], [0], [0], [1], [0, 0, 1, 1], [], []>} : vector<16x32xbf16>, vector<32x96xbf16>, vector<16x96xf32> -> vector<16x96xf32>
    %c1_73 = arith.constant 1 : index
    %c0_74 = arith.constant 0 : index
    %c0_75 = arith.constant 0 : index
    %160 = vector.load %arg6[%c1_73, %c0_74, %c0_75] : memref<2x1x96xf32, #tpu.memory_space<vmem>>, vector<1x1x96xf32>
    %161 = vector.shape_cast %160 : vector<1x1x96xf32> to vector<1x96xf32>
    %162 = vector.broadcast %161 : vector<1x96xf32> to vector<16x96xf32>
    %163 = arith.addf %159, %162 : vector<16x96xf32>
    %164 = vector.extract_strided_slice %163 {offsets = [0, 0], sizes = [16, 16], strides = [1, 1]} : vector<16x96xf32> to vector<16x16xf32>
    %165 = vector.extract_strided_slice %163 {offsets = [0, 16], sizes = [16, 16], strides = [1, 1]} : vector<16x96xf32> to vector<16x16xf32>
    %166 = tpu.concatenate %164, %165 in 0 : vector<16x16xf32>, vector<16x16xf32> -> vector<32x16xf32>
    %167 = vector.extract_strided_slice %163 {offsets = [0, 32], sizes = [16, 16], strides = [1, 1]} : vector<16x96xf32> to vector<16x16xf32>
    %168 = vector.extract_strided_slice %163 {offsets = [0, 48], sizes = [16, 16], strides = [1, 1]} : vector<16x96xf32> to vector<16x16xf32>
    %169 = tpu.concatenate %167, %168 in 0 : vector<16x16xf32>, vector<16x16xf32> -> vector<32x16xf32>
    %170 = vector.extract_strided_slice %163 {offsets = [0, 64], sizes = [16, 16], strides = [1, 1]} : vector<16x96xf32> to vector<16x16xf32>
    %171 = vector.extract_strided_slice %163 {offsets = [0, 80], sizes = [16, 16], strides = [1, 1]} : vector<16x96xf32> to vector<16x16xf32>
    %172 = tpu.concatenate %170, %171 in 0 : vector<16x16xf32>, vector<16x16xf32> -> vector<32x16xf32>
    %173 = arith.truncf %166 : vector<32x16xf32> to vector<32x16xbf16>
    %174 = arith.truncf %169 : vector<32x16xf32> to vector<32x16xbf16>
    %cst_76 = arith.constant dense<0.000000e+00> : vector<32x32xf32>
    %175 = tpu.matmul %173, %174, %cst_76 {dimension_numbers = #tpu.dot_dimension_numbers<[1], [1], [0], [0], [0, 0, 1, 0], [], []>} : vector<32x16xbf16>, vector<32x16xbf16>, vector<32x32xf32> -> vector<32x32xf32>
    %cst_77 = arith.constant 2.500000e-01 : f32
    %176 = vector.broadcast %cst_77 : f32 to vector<32x32xf32>
    %177 = arith.mulf %175, %176 : vector<32x32xf32>
    %178 = arith.addf %177, %25 : vector<32x32xf32>
    %cst_78 = arith.constant dense<0xFF800000> : vector<32xf32>
    %179 = vector.multi_reduction <maximumf>, %178, %cst_78 [1] : vector<32x32xf32> to vector<32xf32>
    %180 = vector.shape_cast %179 : vector<32xf32> to vector<32x1xf32>
    %181 = vector.broadcast %180 : vector<32x1xf32> to vector<32x32xf32>
    %182 = arith.subf %178, %181 : vector<32x32xf32>
    %183 = math.exp %182 : vector<32x32xf32>
    %cst_79 = arith.constant dense<0.000000e+00> : vector<32xf32>
    %184 = vector.multi_reduction <add>, %183, %cst_79 [1] : vector<32x32xf32> to vector<32xf32>
    %185 = vector.shape_cast %184 : vector<32xf32> to vector<32x1xf32>
    %186 = tpu.reciprocal %185 {approx = true} : vector<32x1xf32> -> vector<32x1xf32>
    %187 = vector.broadcast %186 : vector<32x1xf32> to vector<32x32xf32>
    %188 = arith.mulf %183, %187 : vector<32x32xf32>
    %189 = arith.truncf %188 : vector<32x32xf32> to vector<32x32xbf16>
    %190 = arith.truncf %172 : vector<32x16xf32> to vector<32x16xbf16>
    %cst_80 = arith.constant dense<0.000000e+00> : vector<32x16xf32>
    %191 = tpu.matmul %189, %190, %cst_80 {dimension_numbers = #tpu.dot_dimension_numbers<[1], [0], [0], [1], [0, 0, 1, 1], [], []>} : vector<32x32xbf16>, vector<32x16xbf16>, vector<32x16xf32> -> vector<32x16xf32>
    %192 = vector.extract_strided_slice %191 {offsets = [0, 0], sizes = [16, 16], strides = [1, 1]} : vector<32x16xf32> to vector<16x16xf32>
    %193 = vector.extract_strided_slice %191 {offsets = [16, 0], sizes = [16, 16], strides = [1, 1]} : vector<32x16xf32> to vector<16x16xf32>
    %194 = tpu.concatenate %192, %193 in 1 : vector<16x16xf32>, vector<16x16xf32> -> vector<16x32xf32>
    %195 = arith.truncf %194 : vector<16x32xf32> to vector<16x32xbf16>
    %c1_81 = arith.constant 1 : index
    %c0_82 = arith.constant 0 : index
    %c0_83 = arith.constant 0 : index
    %196 = vector.load %arg7[%c1_81, %c0_82, %c0_83] : memref<2x32x32xbf16, #tpu.memory_space<vmem>>, vector<1x32x32xbf16>
    %197 = vector.shape_cast %196 : vector<1x32x32xbf16> to vector<32x32xbf16>
    %cst_84 = arith.constant dense<0.000000e+00> : vector<16x32xf32>
    %198 = tpu.matmul %195, %197, %cst_84 {dimension_numbers = #tpu.dot_dimension_numbers<[1], [0], [0], [1], [0, 0, 1, 1], [], []>} : vector<16x32xbf16>, vector<32x32xbf16>, vector<16x32xf32> -> vector<16x32xf32>
    %c1_85 = arith.constant 1 : index
    %c0_86 = arith.constant 0 : index
    %c0_87 = arith.constant 0 : index
    %199 = vector.load %arg8[%c1_85, %c0_86, %c0_87] : memref<2x1x32xf32, #tpu.memory_space<vmem>>, vector<1x1x32xf32>
    %200 = vector.shape_cast %199 : vector<1x1x32xf32> to vector<1x32xf32>
    %201 = vector.broadcast %200 : vector<1x32xf32> to vector<16x32xf32>
    %202 = arith.addf %198, %201 : vector<16x32xf32>
    %203 = arith.addf %155, %202 : vector<16x32xf32>
    %c1_88 = arith.constant 1 : index
    %c0_89 = arith.constant 0 : index
    %c0_90 = arith.constant 0 : index
    %204 = vector.load %arg9[%c1_88, %c0_89, %c0_90] : memref<2x1x32xf32, #tpu.memory_space<vmem>>, vector<1x1x32xf32>
    %205 = vector.shape_cast %204 : vector<1x1x32xf32> to vector<1x32xf32>
    %c1_91 = arith.constant 1 : index
    %c0_92 = arith.constant 0 : index
    %c0_93 = arith.constant 0 : index
    %206 = vector.load %arg10[%c1_91, %c0_92, %c0_93] : memref<2x1x32xf32, #tpu.memory_space<vmem>>, vector<1x1x32xf32>
    %207 = vector.shape_cast %206 : vector<1x1x32xf32> to vector<1x32xf32>
    %cst_94 = arith.constant dense<0.000000e+00> : vector<16xf32>
    %208 = vector.multi_reduction <add>, %203, %cst_94 [1] : vector<16x32xf32> to vector<16xf32>
    %209 = vector.shape_cast %208 : vector<16xf32> to vector<16x1xf32>
    %cst_95 = arith.constant 3.200000e+01 : f32
    %210 = vector.broadcast %cst_95 : f32 to vector<16x1xf32>
    %211 = arith.divf %209, %210 : vector<16x1xf32>
    %212 = vector.broadcast %211 : vector<16x1xf32> to vector<16x32xf32>
    %213 = arith.subf %203, %212 : vector<16x32xf32>
    %214 = arith.mulf %213, %213 : vector<16x32xf32>
    %cst_96 = arith.constant dense<0.000000e+00> : vector<16xf32>
    %215 = vector.multi_reduction <add>, %214, %cst_96 [1] : vector<16x32xf32> to vector<16xf32>
    %216 = vector.shape_cast %215 : vector<16xf32> to vector<16x1xf32>
    %cst_97 = arith.constant 3.200000e+01 : f32
    %217 = vector.broadcast %cst_97 : f32 to vector<16x1xf32>
    %218 = arith.divf %216, %217 : vector<16x1xf32>
    %219 = vector.broadcast %211 : vector<16x1xf32> to vector<16x32xf32>
    %220 = arith.subf %203, %219 : vector<16x32xf32>
    %cst_98 = arith.constant 9.99999996E-13 : f32
    %221 = vector.broadcast %cst_98 : f32 to vector<16x1xf32>
    %222 = arith.addf %218, %221 : vector<16x1xf32>
    %223 = math.rsqrt %222 : vector<16x1xf32>
    %224 = vector.broadcast %223 : vector<16x1xf32> to vector<16x32xf32>
    %225 = arith.mulf %220, %224 : vector<16x32xf32>
    %226 = vector.broadcast %205 : vector<1x32xf32> to vector<16x32xf32>
    %227 = arith.mulf %225, %226 : vector<16x32xf32>
    %228 = vector.broadcast %207 : vector<1x32xf32> to vector<16x32xf32>
    %229 = arith.addf %227, %228 : vector<16x32xf32>
    %230 = arith.truncf %229 : vector<16x32xf32> to vector<16x32xbf16>
    %c1_99 = arith.constant 1 : index
    %c0_100 = arith.constant 0 : index
    %c0_101 = arith.constant 0 : index
    %231 = vector.load %arg11[%c1_99, %c0_100, %c0_101] : memref<2x32x64xbf16, #tpu.memory_space<vmem>>, vector<1x32x64xbf16>
    %232 = vector.shape_cast %231 : vector<1x32x64xbf16> to vector<32x64xbf16>
    %cst_102 = arith.constant dense<0.000000e+00> : vector<16x64xf32>
    %233 = tpu.matmul %230, %232, %cst_102 {dimension_numbers = #tpu.dot_dimension_numbers<[1], [0], [0], [1], [0, 0, 1, 1], [], []>} : vector<16x32xbf16>, vector<32x64xbf16>, vector<16x64xf32> -> vector<16x64xf32>
    %c1_103 = arith.constant 1 : index
    %c0_104 = arith.constant 0 : index
    %c0_105 = arith.constant 0 : index
    %234 = vector.load %arg12[%c1_103, %c0_104, %c0_105] : memref<2x1x64xf32, #tpu.memory_space<vmem>>, vector<1x1x64xf32>
    %235 = vector.shape_cast %234 : vector<1x1x64xf32> to vector<1x64xf32>
    %236 = vector.broadcast %235 : vector<1x64xf32> to vector<16x64xf32>
    %237 = arith.addf %233, %236 : vector<16x64xf32>
    %cst_106 = arith.constant 5.000000e-01 : f32
    %238 = vector.broadcast %cst_106 : f32 to vector<16x64xf32>
    %239 = arith.mulf %238, %237 : vector<16x64xf32>
    %cst_107 = arith.constant 4.471500e-02 : f32
    %240 = vector.broadcast %cst_107 : f32 to vector<16x64xf32>
    %241 = arith.mulf %240, %237 : vector<16x64xf32>
    %242 = arith.mulf %241, %237 : vector<16x64xf32>
    %243 = arith.mulf %242, %237 : vector<16x64xf32>
    %244 = arith.addf %237, %243 : vector<16x64xf32>
    %cst_108 = arith.constant 0.797884583 : f32
    %245 = vector.broadcast %cst_108 : f32 to vector<16x64xf32>
    %246 = arith.mulf %245, %244 : vector<16x64xf32>
    %247 = math.tanh %246 : vector<16x64xf32>
    %cst_109 = arith.constant 1.000000e+00 : f32
    %248 = vector.broadcast %cst_109 : f32 to vector<16x64xf32>
    %249 = arith.addf %248, %247 : vector<16x64xf32>
    %250 = arith.mulf %239, %249 : vector<16x64xf32>
    %251 = arith.truncf %250 : vector<16x64xf32> to vector<16x64xbf16>
    %c1_110 = arith.constant 1 : index
    %c0_111 = arith.constant 0 : index
    %c0_112 = arith.constant 0 : index
    %252 = vector.load %arg13[%c1_110, %c0_111, %c0_112] : memref<2x64x32xbf16, #tpu.memory_space<vmem>>, vector<1x64x32xbf16>
    %253 = vector.shape_cast %252 : vector<1x64x32xbf16> to vector<64x32xbf16>
    %cst_113 = arith.constant dense<0.000000e+00> : vector<16x32xf32>
    %254 = tpu.matmul %251, %253, %cst_113 {dimension_numbers = #tpu.dot_dimension_numbers<[1], [0], [0], [1], [0, 0, 1, 1], [], []>} : vector<16x64xbf16>, vector<64x32xbf16>, vector<16x32xf32> -> vector<16x32xf32>
    %c1_114 = arith.constant 1 : index
    %c0_115 = arith.constant 0 : index
    %c0_116 = arith.constant 0 : index
    %255 = vector.load %arg14[%c1_114, %c0_115, %c0_116] : memref<2x1x32xf32, #tpu.memory_space<vmem>>, vector<1x1x32xf32>
    %256 = vector.shape_cast %255 : vector<1x1x32xf32> to vector<1x32xf32>
    %257 = vector.broadcast %256 : vector<1x32xf32> to vector<16x32xf32>
    %258 = arith.addf %254, %257 : vector<16x32xf32>
    %259 = arith.addf %229, %258 : vector<16x32xf32>
    %c1_117 = arith.constant 1 : index
    %c0_118 = arith.constant 0 : index
    %c0_119 = arith.constant 0 : index
    %260 = vector.load %arg15[%c1_117, %c0_118, %c0_119] : memref<2x1x32xf32, #tpu.memory_space<vmem>>, vector<1x1x32xf32>
    %261 = vector.shape_cast %260 : vector<1x1x32xf32> to vector<1x32xf32>
    %c1_120 = arith.constant 1 : index
    %c0_121 = arith.constant 0 : index
    %c0_122 = arith.constant 0 : index
    %262 = vector.load %arg16[%c1_120, %c0_121, %c0_122] : memref<2x1x32xf32, #tpu.memory_space<vmem>>, vector<1x1x32xf32>
    %263 = vector.shape_cast %262 : vector<1x1x32xf32> to vector<1x32xf32>
    %cst_123 = arith.constant dense<0.000000e+00> : vector<16xf32>
    %264 = vector.multi_reduction <add>, %259, %cst_123 [1] : vector<16x32xf32> to vector<16xf32>
    %265 = vector.shape_cast %264 : vector<16xf32> to vector<16x1xf32>
    %cst_124 = arith.constant 3.200000e+01 : f32
    %266 = vector.broadcast %cst_124 : f32 to vector<16x1xf32>
    %267 = arith.divf %265, %266 : vector<16x1xf32>
    %268 = vector.broadcast %267 : vector<16x1xf32> to vector<16x32xf32>
    %269 = arith.subf %259, %268 : vector<16x32xf32>
    %270 = arith.mulf %269, %269 : vector<16x32xf32>
    %cst_125 = arith.constant dense<0.000000e+00> : vector<16xf32>
    %271 = vector.multi_reduction <add>, %270, %cst_125 [1] : vector<16x32xf32> to vector<16xf32>
    %272 = vector.shape_cast %271 : vector<16xf32> to vector<16x1xf32>
    %cst_126 = arith.constant 3.200000e+01 : f32
    %273 = vector.broadcast %cst_126 : f32 to vector<16x1xf32>
    %274 = arith.divf %272, %273 : vector<16x1xf32>
    %275 = vector.broadcast %267 : vector<16x1xf32> to vector<16x32xf32>
    %276 = arith.subf %259, %275 : vector<16x32xf32>
    %cst_127 = arith.constant 9.99999996E-13 : f32
    %277 = vector.broadcast %cst_127 : f32 to vector<16x1xf32>
    %278 = arith.addf %274, %277 : vector<16x1xf32>
    %279 = math.rsqrt %278 : vector<16x1xf32>
    %280 = vector.broadcast %279 : vector<16x1xf32> to vector<16x32xf32>
    %281 = arith.mulf %276, %280 : vector<16x32xf32>
    %282 = vector.broadcast %261 : vector<1x32xf32> to vector<16x32xf32>
    %283 = arith.mulf %281, %282 : vector<16x32xf32>
    %284 = vector.broadcast %263 : vector<1x32xf32> to vector<16x32xf32>
    %285 = arith.addf %283, %284 : vector<16x32xf32>
    %286 = vector.extract_strided_slice %285 {offsets = [1, 0], sizes = [15, 32], strides = [1, 1]} : vector<16x32xf32> to vector<15x32xf32>
    %cst_128 = arith.constant 0.000000e+00 : f32
    %287 = vector.broadcast %cst_128 : f32 to vector<1x32xf32>
    %288 = tpu.concatenate %286, %287 in 0 : vector<15x32xf32>, vector<1x32xf32> -> vector<16x32xf32>
    %289 = vector.extract_strided_slice %285 {offsets = [2, 0], sizes = [14, 32], strides = [1, 1]} : vector<16x32xf32> to vector<14x32xf32>
    %cst_129 = arith.constant 0.000000e+00 : f32
    %290 = vector.broadcast %cst_129 : f32 to vector<2x32xf32>
    %291 = tpu.concatenate %289, %290 in 0 : vector<14x32xf32>, vector<2x32xf32> -> vector<16x32xf32>
    %292 = vector.extract_strided_slice %285 {offsets = [3, 0], sizes = [13, 32], strides = [1, 1]} : vector<16x32xf32> to vector<13x32xf32>
    %cst_130 = arith.constant 0.000000e+00 : f32
    %293 = vector.broadcast %cst_130 : f32 to vector<3x32xf32>
    %294 = tpu.concatenate %292, %293 in 0 : vector<13x32xf32>, vector<3x32xf32> -> vector<16x32xf32>
    %295 = tpu.concatenate %285, %288, %291, %294 in 1 : vector<16x32xf32>, vector<16x32xf32>, vector<16x32xf32>, vector<16x32xf32> -> vector<16x128xf32>
    %296 = arith.truncf %295 : vector<16x128xf32> to vector<16x128xbf16>
    %c0_131 = arith.constant 0 : index
    %c0_132 = arith.constant 0 : index
    %297 = vector.load %arg17[%c0_131, %c0_132] : memref<128x384xbf16, #tpu.memory_space<vmem>>, vector<128x384xbf16>
    %cst_133 = arith.constant dense<0.000000e+00> : vector<16x384xf32>
    %298 = tpu.matmul %296, %297, %cst_133 {dimension_numbers = #tpu.dot_dimension_numbers<[1], [0], [0], [1], [0, 0, 1, 1], [], []>} : vector<16x128xbf16>, vector<128x384xbf16>, vector<16x384xf32> -> vector<16x384xf32>
    %c0_134 = arith.constant 0 : index
    %c0_135 = arith.constant 0 : index
    %299 = vector.load %arg18[%c0_134, %c0_135] : memref<1x384xf32, #tpu.memory_space<vmem>>, vector<1x384xf32>
    %300 = vector.broadcast %299 : vector<1x384xf32> to vector<16x384xf32>
    %301 = arith.addf %298, %300 : vector<16x384xf32>
    %cst_136 = arith.constant 0.000000e+00 : f32
    %302 = vector.broadcast %cst_136 : f32 to vector<16x384xf32>
    %303 = arith.maximumf %301, %302 : vector<16x384xf32>
    %c0_137 = arith.constant 0 : index
    %c0_138 = arith.constant 0 : index
    %304 = vector.load %arg2[%c0_137, %c0_138] : memref<16x384xf32, #tpu.memory_space<vmem>>, vector<16x384xf32>
    %305 = arith.mulf %303, %304 : vector<16x384xf32>
    %306 = vector.extract_strided_slice %305 {offsets = [0, 0], sizes = [8, 384], strides = [1, 1]} : vector<16x384xf32> to vector<8x384xf32>
    %cst_139 = arith.constant dense<0xFF800000> : vector<384xf32>
    %307 = vector.multi_reduction <maximumf>, %306, %cst_139 [0] : vector<8x384xf32> to vector<384xf32>
    %308 = vector.shape_cast %307 : vector<384xf32> to vector<1x384xf32>
    %309 = vector.extract_strided_slice %305 {offsets = [8, 0], sizes = [8, 384], strides = [1, 1]} : vector<16x384xf32> to vector<8x384xf32>
    %cst_140 = arith.constant dense<0xFF800000> : vector<384xf32>
    %310 = vector.multi_reduction <maximumf>, %309, %cst_140 [0] : vector<8x384xf32> to vector<384xf32>
    %311 = vector.shape_cast %310 : vector<384xf32> to vector<1x384xf32>
    %312 = tpu.concatenate %308, %311 in 0 : vector<1x384xf32>, vector<1x384xf32> -> vector<2x384xf32>
    %313 = arith.truncf %312 : vector<2x384xf32> to vector<2x384xbf16>
    %c0_141 = arith.constant 0 : index
    %c0_142 = arith.constant 0 : index
    %314 = vector.load %arg19[%c0_141, %c0_142] : memref<384x128xbf16, #tpu.memory_space<vmem>>, vector<384x128xbf16>
    %cst_143 = arith.constant dense<0.000000e+00> : vector<2x128xf32>
    %315 = tpu.matmul %313, %314, %cst_143 {dimension_numbers = #tpu.dot_dimension_numbers<[1], [0], [0], [1], [0, 0, 1, 1], [], []>} : vector<2x384xbf16>, vector<384x128xbf16>, vector<2x128xf32> -> vector<2x128xf32>
    %c0_144 = arith.constant 0 : index
    %c0_145 = arith.constant 0 : index
    %316 = vector.load %arg20[%c0_144, %c0_145] : memref<1x128xf32, #tpu.memory_space<vmem>>, vector<1x128xf32>
    %317 = vector.broadcast %316 : vector<1x128xf32> to vector<2x128xf32>
    %318 = arith.addf %315, %317 : vector<2x128xf32>
    %c0_146 = arith.constant 0 : index
    %c0_147 = arith.constant 0 : index
    %319 = vector.load %arg21[%c0_146, %c0_147] : memref<2x128xf32, #tpu.memory_space<vmem>>, vector<2x128xf32>
    tpu.vector_store %arg21[%c0_146, %c0_147], %318 {strides = array<i32>} : memref<2x128xf32, #tpu.memory_space<vmem>>, vector<2x128xf32>,
    return
  }
}

</mosaic_0001>

<bundles_post_ra>
// kernel: forward.1
= control target key start
LH: loop header
LB: loop body
LE: loop exit
PB: predicated region body
PF: predicated region fallthrough
CT: control target
= control target key end

     0   :  { %s2791_s0 = inlined_call_operand.vmem [shape: f32[16,32], index: 0, kind: input, shape index: {}]   ;;  %s2792_s1 = inlined_call_operand.vmem [shape: f32[32,32], index: 1, kind: input, shape index: {}]   ;;  %s2793_s2 = inlined_call_operand.vmem [shape: f32[16,384], index: 2, kind: input, shape index: {}]   ;;  %s2794_s3 = inlined_call_operand.vmem [shape: f32[1,32], index: 3, kind: input, shape index: {}]   ;;  %s2795_s4 = inlined_call_operand.vmem [shape: f32[1,32], index: 4, kind: input, shape index: {}]   ;;  %s2796_s5 = inlined_call_operand.vmem [shape: bf16[2,32,96], index: 5, kind: input, shape index: {}]   ;;  %s2797_s6 = inlined_call_operand.vmem [shape: f32[2,1,96], index: 6, kind: input, shape index: {}]   ;;  %s2798_s7 = inlined_call_operand.vmem [shape: bf16[2,32,32], index: 7, kind: input, shape index: {}]   ;;  %s2799_s8 = inlined_call_operand.vmem [shape: f32[2,1,32], index: 8, kind: input, shape index: {}]   ;;  %s2800_s9 = inlined_call_operand.vmem [shape: f32[2,1,32], index: 9, kind: input, shape index: {}]   ;;  %s2801_s10 = inlined_call_operand.vmem [shape: f32[2,1,32], index: 10, kind: input, shape index: {}]   ;;  %s2802_s11 = inlined_call_operand.vmem [shape: bf16[2,32,64], index: 11, kind: input, shape index: {}]   ;;  %s2803_s12 = inlined_call_operand.vmem [shape: f32[2,1,64], index: 12, kind: input, shape index: {}]   ;;  %s2804_s13 = inlined_call_operand.vmem [shape: bf16[2,64,32], index: 13, kind: input, shape index: {}]   ;;  %s2805_s14 = inlined_call_operand.vmem [shape: f32[2,1,32], index: 14, kind: input, shape index: {}]   ;;  %s2806_s15 = inlined_call_operand.vmem [shape: f32[2,1,32], index: 15, kind: input, shape index: {}]   ;;  %s2807_s16 = inlined_call_operand.vmem [shape: f32[2,1,32], index: 16, kind: input, shape index: {}]   ;;  %s2808_s17 = inlined_call_operand.vmem [shape: bf16[128,384], index: 17, kind: input, shape index: {}]   ;;  %s2809_s18 = inlined_call_operand.vmem [shape: f32[1,384], index: 18, kind: input, shape index: {}]   ;;  %s2810_s19 = inlined_call_operand.vmem [shape: bf16[384,128], index: 19, kind: input, shape index: {}]   ;;  %s2811_s20 = inlined_call_operand.vmem [shape: f32[1,128], index: 20, kind: input, shape index: {}]   ;;  %s2812_s21 = inlined_call_operand.hbm [shape: f32[2,128], index: 21, kind: output, shape index: {}]  }
   0x1   :  { %2817 = sst [smem:[#allocation5_spill]] %s2791_s0 }
   0x2   :  { %2818 = sst [smem:[#allocation6_spill]] %s2792_s1 }
   0x3   :  { %2819 = sst [smem:[#allocation7_spill]] %s2793_s2 }
   0x4   :  { %2820 = sst [smem:[#allocation8_spill]] %s2794_s3 }
   0x5   :  { %2821 = sst [smem:[#allocation9_spill]] %s2795_s4 }
   0x6   :  { %2822 = sst [smem:[#allocation10_spill]] %s2796_s5 }
   0x7   :  { %s2823_s26 = sld [smem:[#allocation5_spill]]  ;;  %vm74_vm0 = vcmask 261120  }
   0xd   :  { %v70_v0 = vld [vmem:[%s2823_s26] sm:$0xff]  ;;  %v71_v2 = vld [vmem:[%s2823_s26 + $0x8] sm:$0xff] }
   0xe   :  { %v75_v1 = vsel %vm74_vm0, %v70_v0, 0.0  ;;  %v78_v3 = vsel %vm74_vm0, %v71_v2, 0.0 }
   0xf   :  { %76 = vadd.xlane.f32.xlu0 %v75_v1 }
  0x10   :  { %26 = vsyncpa [#allocation3], 0  ;;  %v2147_v4 = vmov 32.0   ;;  %s2824_s0 = sld [smem:[#allocation10_spill]]  ;;  %v2042_v53 = vld [vmem:[%s2797_s6] ss:$0 sm:$0xff] }
  0x11   :  { %2059 = vrcp.f32 %v2147_v4  ;;  %s2825_s23 = sld [smem:[#allocation8_spill]]  ;;  %s2148_s27 = smov 112   ;;  %vm194_vm8 = vcmask 130048   ;;  %vm510_vm15 = vcmask 523264  }
  0x12   :  { %s2826_s2 = sld [smem:[#allocation9_spill]]  ;;  %s2149_s3 = smov 96  }
  0x13   :  { %s2827_s4 = sld [smem:[#allocation6_spill]]  ;;  %s2151_s28 = smov 16  }
  0x16   :  { %v1931_v21 = vld [vmem:[%s2824_s0 + $0x8] sm:$0xff]  ;;  %v1930_v23 = vld [vmem:[%s2824_s0] sm:$0xff] }
  0x17   :  { %79 = vadd.xlane.f32.xlu0 %v78_v3  ;;  %v2060_v5 = vpop.eup %2059  ;;  %170 = vmatpush.bf16.msra.mxu0 %v1931_v21  ;;  %v2040_v42 = vld [vmem:[%s2825_s23] ss:$0 sm:$0xff] }
  0x18   :  { %v82_v6 = vmul.f32 32.0, %v2060_v5  ;;  %vm86_vm1 = vweird.f32 %v2060_v5  ;;  %v2041_v47 = vld [vmem:[%s2826_s2] ss:$0 sm:$0xff]  ;;  %s2150_s2 = smov 64  }
  0x19   :  { %v2312_v4 = vld [vmem:[%s2827_s4] sm:$0xff] }
  0x1a   :  { %v83_v7 = vsub.f32 1.0, %v82_v6 }
  0x1b   :  { %171 = vmatpush.bf16.msra.mxu0 %v1930_v23 }
  0x1c   :  { %v84_v8 = vmul.f32 %v2060_v5, %v83_v7 }
  0x1e   :  { %v85_v9 = vadd.f32 %v2060_v5, %v84_v8 }
  0x20   :  { %v2272_v10 = vsel %vm86_vm1, %v2060_v5, %v85_v9  ;;  %v2319_v9 = vld [vmem:[%s2827_s4 + $0x8] sm:$0xff] }
  0x82   :  { %v77_v11 = vpop.xlane.xlu0 %76 }
  0x83   :  { %v88_v12 = vmul.f32 %v2272_v10, %v77_v11 }
  0x85   :  { %v90_v13 = vsub.f32 %v70_v0, %v88_v12 }
  0x87   :  { %v92_v14 = vmul.f32 %v90_v13, %v90_v13 }
  0x89   :  { %v94_v15 = vsel %vm74_vm0, %v92_v14, 0.0 }
  0x8a   :  { %95 = vadd.xlane.f32.xlu1 %v94_v15  ;;  %v80_v16 = vpop.xlane.xlu0 %79  ;;  %v2326_v15 = vld [vmem:[%s2827_s4 + $0x10] sm:$0xff] }
  0x8b   :  { %v89_v17 = vmul.f32 %v2272_v10, %v80_v16 }
  0x8d   :  { %v91_v18 = vsub.f32 %v71_v2, %v89_v17 }
  0x8f   :  { %v93_v19 = vmul.f32 %v91_v18, %v91_v18 }
  0x91   :  { %v97_v20 = vsel %vm74_vm0, %v93_v19, 0.0 }
  0x92   :  { %98 = vadd.xlane.f32.xlu1 %v97_v20  ;;  %v2333_v20 = vld [vmem:[%s2827_s4 + $0x18] sm:$0xff] }
  0xfd   :  { %v96_v22 = vpop.xlane.xlu1 %95 }
  0xfe   :  { %v100_v24 = vmul.f32 %v96_v22, %v2272_v10 }
 0x100   :  { %v102_v25 = vadd.f32 1e-12, %v100_v24 }
 0x102   :  { %2061 = vrsqrt.f32 %v102_v25  ;;  %vm110_vm3 = vweird.f32 %v102_v25 }
 0x105   :  { %v99_v26 = vpop.xlane.xlu1 %98 }
 0x106   :  { %v101_v27 = vmul.f32 %v99_v26, %v2272_v10 }
 0x108   :  { %v2062_v28 = vpop.eup %2061  ;;  %v103_v29 = vadd.f32 1e-12, %v101_v27 }
 0x109   :  { %v105_v30 = vmul.f32 %v2062_v28, %v102_v25  ;;  %vm111_vm2 = vweird.f32 %v2062_v28 }
 0x10a   :  { %2063 = vrsqrt.f32 %v103_v29  ;;  %vm112_vm4 = vmor %vm110_vm3, %vm111_vm2  ;;  %vm120_vm6 = vweird.f32 %v103_v29 }
 0x10b   :  { %v106_v31 = vmul.f32 %v2062_v28, %v105_v30 }
 0x10d   :  { %v107_v32 = vmul.f32 0.5, %v106_v31 }
 0x10f   :  { %v108_v33 = vsub.f32 1.5, %v107_v32 }
 0x110   :  { %v2064_v34 = vpop.eup %2063 }
 0x111   :  { %v109_v35 = vmul.f32 %v2062_v28, %v108_v33  ;;  %v115_v36 = vmul.f32 %v2064_v34, %v103_v29  ;;  %vm121_vm5 = vweird.f32 %v2064_v34 }
 0x112   :  { %vm122_vm7 = vmor %vm120_vm6, %vm121_vm5 }
 0x113   :  { %v116_v37 = vmul.f32 %v2064_v34, %v115_v36  ;;  %v113_v38 = vsel %vm112_vm4, %v2062_v28, %v109_v35 }
 0x114   :  { %v124_v41 = vmul.f32 %v113_v38, %v90_v13 }
 0x115   :  { %v117_v39 = vmul.f32 0.5, %v116_v37 }
 0x116   :  { %v129_v46 = vmul.f32 %v2040_v42, %v124_v41 }
 0x117   :  { %v118_v40 = vsub.f32 1.5, %v117_v39 }
 0x118   :  { %v2292_v49 = vadd.f32 %v2041_v47, %v129_v46 }
 0x119   :  { %v119_v43 = vmul.f32 %v2064_v34, %v118_v40 }
 0x11b   :  { %v123_v44 = vsel %vm122_vm7, %v2064_v34, %v119_v43 }
 0x11c   :  { %v125_v45 = vmul.f32 %v123_v44, %v91_v18 }
 0x11e   :  { %v130_v48 = vmul.f32 %v2040_v42, %v125_v45 }
 0x120   :  { %v2294_v50 = vadd.f32 %v2041_v47, %v130_v48 }
 0x122   :  { %v140_v51 = vpack.c.bf16 %v2294_v50, %v2292_v49 }
 0x124   :  { %1622 = vmatmul.msk.bf16.vlgmr.msra.gmra.mxu0 %vm74_vm0, %v140_v51 }
 0x1a1   :  { %v173_v52 = vpop.f32.mrf.mxu0 }
 0x1a2   :  { %v174_v55 = vadd.f32 %v2042_v53, %v173_v52 }
 0x1a9   :  { %v175_v54 = vpop.f32.mrf.mxu0 }
 0x1aa   :  { %v176_v56 = vadd.f32 %v2042_v53, %v175_v54 }
 0x1ac   :  { %v186_v57 = vpack.c.bf16 %v176_v56, %v174_v55  ;;  %v2005_v58 = vpack.i.bf16 %v176_v56, %v174_v55 }
 0x1ae   :  { %2006 = vrot.lane.b32.xlu2 %v2005_v58, %s2148_s27  ;;  %190 = vrot.lane.b32.xlu0 %v186_v57, %s2149_s3 }
 0x208   :  { %v2007_v59 = vpop.permute.xlu2 %2006 }
 0x209   :  { %v2009_v60 = vunpack.i.h.bf16 %v2007_v59  ;;  %v2008_v61 = vunpack.i.l.bf16 %v2007_v59 }
 0x20b   :  { %v187_v62 = vpack.c.bf16 %v2009_v60, %v2008_v61 }
 0x20d   :  { %192 = vrot.lane.b32.xlu2 %v187_v62, %s2149_s3 }
 0x220   :  { %v191_v1 = vpop.permute.xlu0 %190 }
 0x221   :  { %v202_v2 = vsel %vm194_vm8, %v191_v1, 0 }
 0x267   :  { %v193_v63 = vpop.permute.xlu2 %192 }
 0x268   :  { %v205_v0 = vsel %vm194_vm8, %v193_v63, 0 }
 0x269   :  { %213 = vmatpush.bf16.xpose.msra.mxu1 %v205_v0 }
 0x271   :  { %214 = vmatpush.bf16.xpose.msra.mxu1 %v202_v2 }
 0x278   :  { %1623 = vmatmul.msk.bf16.vlgmr.msra.gmra.mxu1 %vm194_vm8, %v186_v57 }
 0x288   :  { %1624 = vmatmul.msk.bf16.gmra.mxu1 %vm194_vm8, %v187_v62 }
 0x2f5   :  { %v216_v3 = vpop.f32.mrf.mxu1 }
 0x2f6   :  { %v226_v5 = vmul.f32 0.25, %v216_v3 }
 0x2f8   :  { %v230_v6 = vadd.f32 %v226_v5, %v2312_v4  ;;  %v1932_v5 = vld [vmem:[%s2798_s7] sm:$0xff] }
 0x2fa   :  { %v234_v7 = vsel %vm74_vm0, %v230_v6, -inf }
 0x2fb   :  { %235 = vmax.xlane.f32.xlu1 %v234_v7 }
 0x2fd   :  { %v218_v8 = vpop.f32.mrf.mxu1 }
 0x2fe   :  { %v227_v11 = vmul.f32 0.25, %v218_v8 }
 0x300   :  { %v231_v12 = vadd.f32 %v227_v11, %v2319_v9 }
 0x302   :  { %v237_v13 = vsel %vm74_vm0, %v231_v12, -inf }
 0x303   :  { %238 = vmax.xlane.f32.xlu2 %v237_v13 }
 0x305   :  { %v221_v14 = vpop.f32.mrf.mxu1 }
 0x306   :  { %v228_v16 = vmul.f32 0.25, %v221_v14  ;;  %v2043_v14 = vld [vmem:[%s2799_s8] ss:$0 sm:$0xff] }
 0x308   :  { %v232_v17 = vadd.f32 %v228_v16, %v2326_v15 }
 0x30a   :  { %v240_v18 = vsel %vm74_vm0, %v232_v17, -inf }
 0x30b   :  { %241 = vmax.xlane.f32.xlu1 %v240_v18 }
 0x30d   :  { %v223_v19 = vpop.f32.mrf.mxu1 }
 0x30e   :  { %v229_v21 = vmul.f32 0.25, %v223_v19 }
 0x310   :  { %v233_v22 = vadd.f32 %v229_v21, %v2333_v20 }
 0x312   :  { %v243_v23 = vsel %vm74_vm0, %v233_v22, -inf }
 0x313   :  { %244 = vmax.xlane.f32.xlu1 %v243_v23 }
 0x31b   :  { %280 = vrot.lane.b32.xlu2 %v186_v57, %s2150_s2 }
 0x36e   :  { %v236_v24 = vpop.xlane.xlu1 %235 }
 0x36f   :  { %v246_v25 = vsub.f32 %v230_v6, %v236_v24 }
 0x371   :  { %v250_v26 = vmul.f32 1.442695, %v246_v25 }
 0x373   :  { %2065 = vpow2.f32 %v250_v26 }
 0x376   :  { %v239_v27 = vpop.xlane.xlu2 %238 }
 0x377   :  { %v247_v28 = vsub.f32 %v231_v12, %v239_v27 }
 0x379   :  { %v2066_v29 = vpop.eup %2065  ;;  %v252_v30 = vmul.f32 1.442695, %v247_v28 }
 0x37a   :  { %v258_v31 = vsel %vm74_vm0, %v2066_v29, 0.0 }
 0x37b   :  { %2067 = vpow2.f32 %v252_v30  ;;  %259 = vadd.xlane.f32.xlu0 %v258_v31 }
 0x37e   :  { %v242_v32 = vpop.xlane.xlu1 %241  ;;  %v281_v52 = vpop.permute.xlu2 %280 }
 0x37f   :  { %v248_v40 = vsub.f32 %v232_v17, %v242_v32 }
 0x381   :  { %v2068_v33 = vpop.eup %2067  ;;  %v254_v41 = vmul.f32 1.442695, %v248_v40 }
 0x382   :  { %v261_v34 = vsel %vm74_vm0, %v2068_v33, 0.0 }
 0x383   :  { %262 = vadd.xlane.f32.xlu1 %v261_v34 }
 0x386   :  { %v245_v35 = vpop.xlane.xlu1 %244 }
 0x387   :  { %v249_v36 = vsub.f32 %v233_v22, %v245_v35  ;;  %v1934_v35 = vld [vmem:[%s2802_s11] sm:$0xff] }
 0x389   :  { %v256_v37 = vmul.f32 1.442695, %v249_v36 }
 0x38b   :  { %2069 = vpow2.f32 %v256_v37 }
 0x38c   :  { %2071 = vpow2.f32 %v254_v41 }
 0x391   :  { %v2070_v38 = vpop.eup %2069 }
 0x392   :  { %v267_v39 = vsel %vm74_vm0, %v2070_v38, 0.0  ;;  %v2072_v42 = vpop.eup %2071 }
 0x393   :  { %268 = vadd.xlane.f32.xlu0 %v267_v39  ;;  %v264_v43 = vsel %vm74_vm0, %v2072_v42, 0.0 }
 0x39c   :  { %282 = vrot.lane.b32.xlu1 %v187_v62, %s2150_s2  ;;  %v1933_v62 = vld [vmem:[%s2798_s7 + $0x8] sm:$0xff] }
 0x39d   :  { %351 = vmatpush.bf16.msra.mxu3 %v1933_v62 }
 0x3a1   :  { %352 = vmatpush.bf16.msra.mxu3 %v1932_v5  ;;  %v1937_v5 = vld [vmem:[%s2804_s13 + $0x8] sm:$0xff] }
 0x3c6   :  { %265 = vadd.xlane.f32.xlu1 %v264_v43 }
 0x3ee   :  { %v260_v45 = vpop.xlane.xlu0 %259 }
 0x3f6   :  { %v263_v44 = vpop.xlane.xlu1 %262 }
 0x3f7   :  { %2073 = vrcp.f32 %v263_v44 }
 0x3f8   :  { %2075 = vrcp.f32 %v260_v45 }
 0x3fd   :  { %v2074_v46 = vpop.eup %2073 }
 0x3fe   :  { %v2076_v48 = vpop.eup %2075  ;;  %v275_v51 = vmul.f32 %v2074_v46, %v2068_v33 }
 0x3ff   :  { %v274_v53 = vmul.f32 %v2076_v48, %v2066_v29 }
 0x401   :  { %v278_v54 = vpack.c.bf16 %v275_v51, %v274_v53 }
 0x406   :  { %v269_v55 = vpop.xlane.xlu0 %268 }
 0x407   :  { %2077 = vrcp.f32 %v269_v55 }
 0x40d   :  { %v2078_v57 = vpop.eup %2077 }
 0x40e   :  { %v283_v47 = vpop.permute.xlu1 %282  ;;  %v277_v60 = vmul.f32 %v2078_v57, %v2070_v38 }
 0x40f   :  { %298 = vmatpush.bf16.msra.mxu2 %v283_v47 }
 0x413   :  { %299 = vmatpush.bf16.msra.mxu2 %v281_v52 }
 0x416   :  { %1625 = vmatmul.msk.bf16.vlgmr.msra.gmra.mxu2 %vm74_vm0, %v278_v54 }
 0x439   :  { %v266_v56 = vpop.xlane.xlu1 %265 }
 0x43a   :  { %2079 = vrcp.f32 %v266_v56  ;;  %v2044_v56 = vld [vmem:[%s2800_s9] ss:$0 sm:$0xff] }
 0x440   :  { %v2080_v58 = vpop.eup %2079 }
 0x441   :  { %v276_v59 = vmul.f32 %v2080_v58, %v2072_v42 }
 0x443   :  { %v279_v61 = vpack.c.bf16 %v277_v60, %v276_v59 }
 0x445   :  { %1626 = vmatmul.msk.bf16.gmra.mxu2 %vm74_vm0, %v279_v61  ;;  %v2045_v61 = vld [vmem:[%s2801_s10] ss:$0 sm:$0xff] }
 0x499   :  { %v301_v63 = vpop.f32.mrf.mxu2 }
 0x4a1   :  { %v303_v0 = vpop.f32.mrf.mxu2 }
 0x4c8   :  { %v306_v1 = vpop.f32.mrf.mxu2 }
 0x4d0   :  { %v308_v2 = vpop.f32.mrf.mxu2 }
 0x4d1   :  { %v2010_v3 = vpack.i.bf16 %v308_v2, %v306_v1  ;;  %v1939_v2 = vld [vmem:[%s2804_s13 + $0x18] sm:$0xff] }
 0x4d2   :  { %518 = vmatpush.bf16.msrb.mxu3 %v1939_v2 }
 0x4d3   :  { %2011 = vrot.lane.b32.xlu2 %v2010_v3, %s2151_s28  ;;  %v1938_v3 = vld [vmem:[%s2804_s13 + $0x10] sm:$0xff] }
 0x4d6   :  { %519 = vmatpush.bf16.msrb.mxu3 %v1938_v3 }
 0x4da   :  { %520 = vmatpush.bf16.msrb.mxu3 %v1937_v5 }
 0x52d   :  { %v2012_v6 = vpop.permute.xlu2 %2011 }
 0x52e   :  { %v2014_v7 = vunpack.i.h.bf16 %v2012_v6  ;;  %v2013_v8 = vunpack.i.l.bf16 %v2012_v6  ;;  %v1936_v6 = vld [vmem:[%s2804_s13] sm:$0xff] }
 0x52f   :  { %521 = vmatpush.bf16.msrb.mxu3 %v1936_v6 }
 0x530   :  { %v319_v11 = vsel %vm194_vm8, %v301_v63, %v2013_v8  ;;  %v320_v12 = vsel %vm194_vm8, %v303_v0, %v2014_v7  ;;  %v2046_v7 = vld [vmem:[%s2803_s12] ss:$0 sm:$0xff] }
 0x531   :  { %v321_v13 = vpack.c.bf16 %v320_v12, %v319_v11 }
 0x533   :  { %1635 = vmatmul.msk.bf16.vlgmr.msra.gmra.mxu3 %vm74_vm0, %v321_v13 }
 0x5b6   :  { %v354_v16 = vpop.f32.mrf.mxu3 }
 0x5b7   :  { %v355_v17 = vadd.f32 %v2043_v14, %v354_v16 }
 0x5b9   :  { %v359_v18 = vadd.f32 %v355_v17, %v2292_v49 }
 0x5bb   :  { %v363_v19 = vsel %vm74_vm0, %v359_v18, 0.0 }
 0x5bc   :  { %364 = vadd.xlane.f32.xlu0 %v363_v19 }
 0x5be   :  { %v356_v21 = vpop.f32.mrf.mxu3 }
 0x5bf   :  { %v357_v22 = vadd.f32 %v2043_v14, %v356_v21 }
 0x5c1   :  { %v360_v23 = vadd.f32 %v357_v22, %v2294_v50  ;;  %v1935_v50 = vld [vmem:[%s2802_s11 + $0x8] sm:$0xff] }
 0x5c2   :  { %447 = vmatpush.bf16.msrb.mxu0 %v1935_v50  ;;  %v2047_v50 = vld [vmem:[%s2805_s14] ss:$0 sm:$0xff] }
 0x5c3   :  { %v366_v24 = vsel %vm74_vm0, %v360_v23, 0.0 }
 0x5c4   :  { %367 = vadd.xlane.f32.xlu2 %v366_v24 }
 0x5c6   :  { %448 = vmatpush.bf16.msrb.mxu0 %v1934_v35 }
 0x62f   :  { %v365_v25 = vpop.xlane.xlu0 %364 }
 0x630   :  { %v369_v26 = vmul.f32 %v365_v25, %v2272_v10 }
 0x632   :  { %v371_v27 = vsub.f32 %v359_v18, %v369_v26 }
 0x634   :  { %v373_v28 = vmul.f32 %v371_v27, %v371_v27 }
 0x636   :  { %v375_v29 = vsel %vm74_vm0, %v373_v28, 0.0 }
 0x637   :  { %v368_v30 = vpop.xlane.xlu2 %367  ;;  %376 = vadd.xlane.f32.xlu0 %v375_v29 }
 0x638   :  { %v370_v49 = vmul.f32 %v368_v30, %v2272_v10 }
 0x63a   :  { %v372_v31 = vsub.f32 %v360_v23, %v370_v49 }
 0x63c   :  { %v374_v32 = vmul.f32 %v372_v31, %v372_v31 }
 0x63e   :  { %v378_v33 = vsel %vm74_vm0, %v374_v32, 0.0 }
 0x63f   :  { %379 = vadd.xlane.f32.xlu0 %v378_v33 }
 0x6aa   :  { %v377_v34 = vpop.xlane.xlu0 %376 }
 0x6ab   :  { %v381_v36 = vmul.f32 %v377_v34, %v2272_v10 }
 0x6ad   :  { %v383_v37 = vadd.f32 1e-12, %v381_v36 }
 0x6af   :  { %2081 = vrsqrt.f32 %v383_v37  ;;  %vm391_vm10 = vweird.f32 %v383_v37 }
 0x6b2   :  { %v380_v38 = vpop.xlane.xlu0 %379 }
 0x6b3   :  { %v382_v39 = vmul.f32 %v380_v38, %v2272_v10 }
 0x6b5   :  { %v2082_v40 = vpop.eup %2081  ;;  %v384_v41 = vadd.f32 1e-12, %v382_v39 }
 0x6b6   :  { %v386_v42 = vmul.f32 %v2082_v40, %v383_v37  ;;  %vm392_vm9 = vweird.f32 %v2082_v40 }
 0x6b7   :  { %2083 = vrsqrt.f32 %v384_v41  ;;  %vm393_vm11 = vmor %vm391_vm10, %vm392_vm9  ;;  %vm401_vm13 = vweird.f32 %v384_v41 }
 0x6b8   :  { %v387_v43 = vmul.f32 %v2082_v40, %v386_v42 }
 0x6ba   :  { %v388_v44 = vmul.f32 0.5, %v387_v43 }
 0x6bc   :  { %v389_v45 = vsub.f32 1.5, %v388_v44 }
 0x6bd   :  { %v2084_v46 = vpop.eup %2083 }
 0x6be   :  { %v390_v47 = vmul.f32 %v2082_v40, %v389_v45  ;;  %v396_v48 = vmul.f32 %v2084_v46, %v384_v41  ;;  %vm402_vm12 = vweird.f32 %v2084_v46 }
 0x6bf   :  { %vm403_vm14 = vmor %vm401_vm13, %vm402_vm12 }
 0x6c0   :  { %v397_v51 = vmul.f32 %v2084_v46, %v396_v48  ;;  %v394_v52 = vsel %vm393_vm11, %v2082_v40, %v390_v47 }
 0x6c1   :  { %v405_v55 = vmul.f32 %v394_v52, %v371_v27 }
 0x6c2   :  { %v398_v53 = vmul.f32 0.5, %v397_v51 }
 0x6c3   :  { %v410_v60 = vmul.f32 %v2044_v56, %v405_v55 }
 0x6c4   :  { %v399_v54 = vsub.f32 1.5, %v398_v53 }
 0x6c5   :  { %v415_v63 = vadd.f32 %v2045_v61, %v410_v60 }
 0x6c6   :  { %v400_v57 = vmul.f32 %v2084_v46, %v399_v54  ;;  %v1941_v54 = vld [vmem:[%s2824_s0 + $0x18] sm:$0xff] }
 0x6c7   :  { %618 = vmatpush.bf16.msra.mxu0 %v1941_v54 }
 0x6c8   :  { %v404_v58 = vsel %vm403_vm14, %v2084_v46, %v400_v57  ;;  %v1940_v57 = vld [vmem:[%s2824_s0 + $0x10] sm:$0xff]  ;;  %s1605_s0 = sshll.u32 %s2812_s21, 4  ;;  %s1606_s0 = int_to_ptr.hbm [resolvable:$true] %s1605_s0 }
 0x6c9   :  { %v406_v59 = vmul.f32 %v404_v58, %v372_v31 }
 0x6cb   :  { %v411_v62 = vmul.f32 %v2044_v56, %v406_v59  ;;  %619 = vmatpush.bf16.msra.mxu0 %v1940_v57 }
 0x6cd   :  { %v416_v0 = vadd.f32 %v2045_v61, %v411_v62 }
 0x6cf   :  { %v417_v1 = vpack.c.bf16 %v416_v0, %v415_v63 }
 0x6d1   :  { %1644 = vmatmul.msk.bf16.vlgmr.msrb.gmra.mxu0 %vm74_vm0, %v417_v1 }
 0x74e   :  { %v450_v8 = vpop.f32.mrf.mxu0 }
 0x74f   :  { %v451_v11 = vadd.f32 %v2046_v7, %v450_v8 }
 0x751   :  { %v457_v12 = vmul.f32 0.044715, %v451_v11  ;;  %v455_v29 = vmul.f32 0.5, %v451_v11 }
 0x753   :  { %v459_v13 = vmul.f32 %v457_v12, %v451_v11 }
 0x755   :  { %v461_v14 = vmul.f32 %v459_v13, %v451_v11  ;;  %v2048_v13 = vld [vmem:[%s2806_s15] ss:$0 sm:$0xff] }
 0x756   :  { %v452_v16 = vpop.f32.mrf.mxu0 }
 0x757   :  { %v463_v17 = vadd.f32 %v461_v14, %v451_v11  ;;  %v453_v18 = vadd.f32 %v2046_v7, %v452_v16 }
 0x759   :  { %v458_v19 = vmul.f32 0.044715, %v453_v18  ;;  %v465_v21 = vmul.f32 0.7978846, %v463_v17  ;;  %v456_v30 = vmul.f32 0.5, %v453_v18 }
 0x75b   :  { %v460_v22 = vmul.f32 %v458_v19, %v453_v18  ;;  %2085 = vtanh.f32 %v465_v21 }
 0x75d   :  { %v462_v23 = vmul.f32 %v460_v22, %v453_v18 }
 0x75f   :  { %v464_v24 = vadd.f32 %v462_v23, %v453_v18  ;;  %v2049_v18 = vld [vmem:[%s2807_s16] ss:$0 sm:$0xff] }
 0x761   :  { %v466_v25 = vmul.f32 0.7978846, %v464_v24  ;;  %v2086_v26 = vpop.eup %2085 }
 0x762   :  { %v469_v27 = vadd.f32 1.0, %v2086_v26 }
 0x763   :  { %2087 = vtanh.f32 %v466_v25 }
 0x764   :  { %v471_v31 = vmul.f32 %v469_v27, %v455_v29  ;;  %v2050_v27 = vld [vmem:[%s2797_s6 + $0x1] ss:$0 sm:$0xff] }
 0x769   :  { %v2088_v28 = vpop.eup %2087 }
 0x76a   :  { %v470_v49 = vadd.f32 1.0, %v2088_v28 }
 0x76c   :  { %v472_v32 = vmul.f32 %v470_v49, %v456_v30 }
 0x76e   :  { %v473_v33 = vpack.c.bf16 %v472_v32, %v471_v31 }
 0x770   :  { %1661 = vmatmul.msk.bf16.vlgmr.msrb.gmra.mxu3 %vm510_vm15, %v473_v33 }
 0x7f3   :  { %v523_v34 = vpop.f32.mrf.mxu3 }
 0x7f4   :  { %v524_v35 = vadd.f32 %v2047_v50, %v523_v34 }
 0x7f6   :  { %v528_v36 = vadd.f32 %v524_v35, %v415_v63 }
 0x7f8   :  { %v532_v37 = vsel %vm74_vm0, %v528_v36, 0.0 }
 0x7f9   :  { %533 = vadd.xlane.f32.xlu0 %v532_v37 }
 0x7fb   :  { %v525_v38 = vpop.f32.mrf.mxu3 }
 0x7fc   :  { %v526_v39 = vadd.f32 %v2047_v50, %v525_v38 }
 0x7fe   :  { %v529_v40 = vadd.f32 %v526_v39, %v416_v0 }
 0x800   :  { %v535_v41 = vsel %vm74_vm0, %v529_v40, 0.0 }
 0x801   :  { %536 = vadd.xlane.f32.xlu1 %v535_v41 }
 0x86c   :  { %v534_v42 = vpop.xlane.xlu0 %533 }
 0x86d   :  { %v538_v43 = vmul.f32 %v534_v42, %v2272_v10 }
 0x86f   :  { %v540_v44 = vsub.f32 %v528_v36, %v538_v43 }
 0x871   :  { %v542_v45 = vmul.f32 %v540_v44, %v540_v44 }
 0x873   :  { %v544_v46 = vsel %vm74_vm0, %v542_v45, 0.0 }
 0x874   :  { %v537_v47 = vpop.xlane.xlu1 %536  ;;  %545 = vadd.xlane.f32.xlu0 %v544_v46 }
 0x875   :  { %v539_v48 = vmul.f32 %v537_v47, %v2272_v10 }
 0x877   :  { %v541_v51 = vsub.f32 %v529_v40, %v539_v48 }
 0x879   :  { %v543_v52 = vmul.f32 %v541_v51, %v541_v51 }
 0x87b   :  { %v547_v53 = vsel %vm74_vm0, %v543_v52, 0.0 }
 0x87c   :  { %548 = vadd.xlane.f32.xlu1 %v547_v53 }
 0x8e7   :  { %v546_v55 = vpop.xlane.xlu0 %545 }
 0x8e8   :  { %v550_v56 = vmul.f32 %v546_v55, %v2272_v10 }
 0x8ea   :  { %v552_v58 = vadd.f32 1e-12, %v550_v56 }
 0x8ec   :  { %2089 = vrsqrt.f32 %v552_v58  ;;  %vm560_vm2 = vweird.f32 %v552_v58 }
 0x8ef   :  { %v549_v59 = vpop.xlane.xlu1 %548 }
 0x8f0   :  { %v551_v60 = vmul.f32 %v549_v59, %v2272_v10 }
 0x8f2   :  { %v2090_v61 = vpop.eup %2089  ;;  %v553_v62 = vadd.f32 1e-12, %v551_v60 }
 0x8f3   :  { %v555_v63 = vmul.f32 %v2090_v61, %v552_v58  ;;  %vm561_vm1 = vweird.f32 %v2090_v61 }
 0x8f4   :  { %2091 = vrsqrt.f32 %v553_v62  ;;  %vm562_vm3 = vmor %vm560_vm2, %vm561_vm1  ;;  %vm570_vm5 = vweird.f32 %v553_v62 }
 0x8f5   :  { %v556_v0 = vmul.f32 %v2090_v61, %v555_v63 }
 0x8f7   :  { %v557_v1 = vmul.f32 0.5, %v556_v0 }
 0x8f9   :  { %v558_v2 = vsub.f32 1.5, %v557_v1 }
 0x8fa   :  { %v2092_v3 = vpop.eup %2091 }
 0x8fb   :  { %v559_v5 = vmul.f32 %v2090_v61, %v558_v2  ;;  %v565_v6 = vmul.f32 %v2092_v3, %v553_v62  ;;  %vm571_vm4 = vweird.f32 %v2092_v3 }
 0x8fc   :  { %vm572_vm6 = vmor %vm570_vm5, %vm571_vm4  ;;  %vm1056_vm5 = vcmask 1044480  }
 0x8fd   :  { %v566_v7 = vmul.f32 %v2092_v3, %v565_v6  ;;  %v563_v8 = vsel %vm562_vm3, %v2090_v61, %v559_v5 }
 0x8fe   :  { %v574_v14 = vmul.f32 %v563_v8, %v540_v44 }
 0x8ff   :  { %v567_v11 = vmul.f32 0.5, %v566_v7 }
 0x900   :  { %v579_v19 = vmul.f32 %v2048_v13, %v574_v14 }
 0x901   :  { %v568_v12 = vsub.f32 1.5, %v567_v11 }
 0x902   :  { %v2420_v23 = vadd.f32 %v2049_v18, %v579_v19 }
 0x903   :  { %v569_v16 = vmul.f32 %v2092_v3, %v568_v12 }
 0x905   :  { %v573_v17 = vsel %vm572_vm6, %v2092_v3, %v569_v16  ;;  %vm1050_vm6 = vcmask 1045504  }
 0x906   :  { %v575_v21 = vmul.f32 %v573_v17, %v541_v51 }
 0x908   :  { %v580_v22 = vmul.f32 %v2048_v13, %v575_v21 }
 0x90a   :  { %v2422_v24 = vadd.f32 %v2049_v18, %v580_v22 }
 0x90c   :  { %v586_v25 = vpack.c.bf16 %v2422_v24, %v2420_v23 }
 0x90e   :  { %1675 = vmatmul.msk.bf16.vlgmr.msra.gmra.mxu0 %vm74_vm0, %v586_v25 }
 0x98b   :  { %v621_v26 = vpop.f32.mrf.mxu0 }
 0x98c   :  { %v622_v29 = vadd.f32 %v2050_v27, %v621_v26 }
 0x993   :  { %v623_v28 = vpop.f32.mrf.mxu0 }
 0x994   :  { %v624_v30 = vadd.f32 %v2050_v27, %v623_v28 }
 0x996   :  { %v2015_v49 = vpack.i.bf16 %v624_v30, %v622_v29  ;;  %v2430_v31 = vpack.c.bf16 %v624_v30, %v622_v29 }
 0x998   :  { %2016 = vrot.lane.b32.xlu0 %v2015_v49, %s2148_s27  ;;  %638 = vrot.lane.b32.xlu1 %v2430_v31, %s2149_s3  ;;  %s2828_s27 = sld [smem:[#allocation7_spill]] }
 0xa0a   :  { %v2017_v32 = vpop.permute.xlu0 %2016  ;;  %v639_v37 = vpop.permute.xlu1 %638 }
 0xa0b   :  { %v2019_v33 = vunpack.i.h.bf16 %v2017_v32  ;;  %v2018_v50 = vunpack.i.l.bf16 %v2017_v32  ;;  %v649_v38 = vsel %vm194_vm8, %v639_v37, 0 }
 0xa0d   :  { %v635_v34 = vpack.c.bf16 %v2019_v33, %v2018_v50 }
 0xa0f   :  { %640 = vrot.lane.b32.xlu2 %v635_v34, %s2149_s3 }
 0xa69   :  { %v641_v35 = vpop.permute.xlu2 %640 }
 0xa6a   :  { %v652_v36 = vsel %vm194_vm8, %v641_v35, 0 }
 0xa6b   :  { %660 = vmatpush.bf16.xpose.msrb.mxu2 %v652_v36  ;;  %v1942_v36 = vld [vmem:[%s2798_s7 + $0x10] sm:$0xff] }
 0xa73   :  { %661 = vmatpush.bf16.xpose.msrb.mxu2 %v649_v38 }
 0xa7a   :  { %1676 = vmatmul.msk.bf16.vlgmr.msrb.gmra.mxu2 %vm194_vm8, %v2430_v31 }
 0xa8a   :  { %1677 = vmatmul.msk.bf16.gmra.mxu2 %vm194_vm8, %v635_v34 }
 0xafd   :  { %v663_v39 = vpop.f32.mrf.mxu2 }
 0xafe   :  { %v673_v40 = vmul.f32 0.25, %v663_v39 }
 0xb00   :  { %v677_v41 = vadd.f32 %v673_v40, %v2312_v4 }
 0xb02   :  { %v681_v42 = vsel %vm74_vm0, %v677_v41, -inf }
 0xb03   :  { %682 = vmax.xlane.f32.xlu0 %v681_v42 }
 0xb05   :  { %v665_v43 = vpop.f32.mrf.mxu2 }
 0xb06   :  { %v674_v44 = vmul.f32 0.25, %v665_v43  ;;  %v2051_v43 = vld [vmem:[%s2799_s8 + $0x1] ss:$0 sm:$0xff] }
 0xb08   :  { %v678_v45 = vadd.f32 %v674_v44, %v2319_v9 }
 0xb0a   :  { %v684_v46 = vsel %vm74_vm0, %v678_v45, -inf }
 0xb0b   :  { %685 = vmax.xlane.f32.xlu2 %v684_v46 }
 0xb0d   :  { %v668_v47 = vpop.f32.mrf.mxu2 }
 0xb0e   :  { %v675_v48 = vmul.f32 0.25, %v668_v47 }
 0xb10   :  { %v679_v51 = vadd.f32 %v675_v48, %v2326_v15 }
 0xb12   :  { %v687_v52 = vsel %vm74_vm0, %v679_v51, -inf }
 0xb13   :  { %688 = vmax.xlane.f32.xlu1 %v687_v52 }
 0xb15   :  { %v670_v53 = vpop.f32.mrf.mxu2 }
 0xb16   :  { %v676_v54 = vmul.f32 0.25, %v670_v53 }
 0xb18   :  { %v680_v4 = vadd.f32 %v676_v54, %v2333_v20 }
 0xb1a   :  { %v690_v55 = vsel %vm74_vm0, %v680_v4, -inf }
 0xb1b   :  { %691 = vmax.xlane.f32.xlu0 %v690_v55 }
 0xb2c   :  { %729 = vrot.lane.b32.xlu1 %v635_v34, %s2150_s2 }
 0xb76   :  { %v683_v9 = vpop.xlane.xlu0 %682 }
 0xb77   :  { %v693_v56 = vsub.f32 %v677_v41, %v683_v9 }
 0xb79   :  { %v697_v57 = vmul.f32 1.442695, %v693_v56 }
 0xb7b   :  { %2093 = vpow2.f32 %v697_v57 }
 0xb7e   :  { %v686_v58 = vpop.xlane.xlu2 %685 }
 0xb7f   :  { %v694_v59 = vsub.f32 %v678_v45, %v686_v58 }
 0xb81   :  { %v2094_v60 = vpop.eup %2093  ;;  %v699_v15 = vmul.f32 1.442695, %v694_v59 }
 0xb82   :  { %v705_v61 = vsel %vm74_vm0, %v2094_v60, 0.0 }
 0xb83   :  { %2095 = vpow2.f32 %v699_v15  ;;  %706 = vadd.xlane.f32.xlu2 %v705_v61 }
 0xb86   :  { %v689_v62 = vpop.xlane.xlu1 %688 }
 0xb87   :  { %v695_v63 = vsub.f32 %v679_v51, %v689_v62  ;;  %v1944_v62 = vld [vmem:[%s2802_s11 + $0x10] sm:$0xff] }
 0xb89   :  { %v2096_v20 = vpop.eup %2095  ;;  %v701_v0 = vmul.f32 1.442695, %v695_v63 }
 0xb8a   :  { %v708_v1 = vsel %vm74_vm0, %v2096_v20, 0.0 }
 0xb8b   :  { %2097 = vpow2.f32 %v701_v0  ;;  %709 = vadd.xlane.f32.xlu0 %v708_v1 }
 0xb8e   :  { %v692_v2 = vpop.xlane.xlu0 %691 }
 0xb8f   :  { %v696_v3 = vsub.f32 %v680_v4, %v692_v2 }
 0xb91   :  { %v2098_v5 = vpop.eup %2097  ;;  %v703_v6 = vmul.f32 1.442695, %v696_v3 }
 0xb92   :  { %v711_v7 = vsel %vm74_vm0, %v2098_v5, 0.0 }
 0xb93   :  { %2099 = vpow2.f32 %v703_v6  ;;  %712 = vadd.xlane.f32.xlu0 %v711_v7 }
 0xb99   :  { %v2100_v8 = vpop.eup %2099 }
 0xb9a   :  { %v714_v11 = vsel %vm74_vm0, %v2100_v8, 0.0 }
 0xb9b   :  { %727 = vrot.lane.b32.xlu2 %v2430_v31, %s2150_s2  ;;  %715 = vadd.xlane.f32.xlu0 %v714_v11  ;;  %v1943_v31 = vld [vmem:[%s2798_s7 + $0x18] sm:$0xff] }
 0xb9c   :  { %800 = vmatpush.bf16.msrb.mxu1 %v1943_v31  ;;  %v1949_v31 = vld [vmem:[%s2804_s13 + $0x38] sm:$0xff] }
 0xb9e   :  { %v730_v12 = vpop.permute.xlu1 %729 }
 0xb9f   :  { %745 = vmatpush.bf16.msra.mxu3 %v730_v12 }
 0xba0   :  { %801 = vmatpush.bf16.msrb.mxu1 %v1942_v36 }
 0xba4   :  { %972 = vmatpush.bf16.msra.mxu1 %v1949_v31  ;;  %v2056_v31 = vld [vmem:[%s2806_s15 + $0x1] ss:$0 sm:$0xff]  ;;  %s2152_s15 = smov 32  }
 0xbf6   :  { %v707_v13 = vpop.xlane.xlu2 %706 }
 0xbf7   :  { %2101 = vrcp.f32 %v707_v13 }
 0xbfd   :  { %v2102_v17 = vpop.eup %2101 }
 0xbfe   :  { %v728_v14 = vpop.permute.xlu2 %727  ;;  %v710_v16 = vpop.xlane.xlu0 %709  ;;  %v721_v19 = vmul.f32 %v2102_v17, %v2094_v60 }
 0xbff   :  { %2103 = vrcp.f32 %v710_v16  ;;  %746 = vmatpush.bf16.msra.mxu3 %v728_v14 }
 0xc05   :  { %v2104_v18 = vpop.eup %2103 }
 0xc06   :  { %v722_v21 = vmul.f32 %v2104_v18, %v2096_v20  ;;  %v713_v22 = vpop.xlane.xlu0 %712  ;;  %v2052_v18 = vld [vmem:[%s2800_s9 + $0x1] ss:$0 sm:$0xff] }
 0xc07   :  { %2105 = vrcp.f32 %v713_v22 }
 0xc08   :  { %v725_v25 = vpack.c.bf16 %v722_v21, %v721_v19 }
 0xc0a   :  { %1678 = vmatmul.msk.bf16.vlgmr.msra.gmra.mxu3 %vm74_vm0, %v725_v25  ;;  %v2053_v25 = vld [vmem:[%s2801_s10 + $0x1] ss:$0 sm:$0xff] }
 0xc0d   :  { %v2106_v27 = vpop.eup %2105 }
 0xc0e   :  { %v716_v26 = vpop.xlane.xlu0 %715  ;;  %v723_v29 = vmul.f32 %v2106_v27, %v2098_v5 }
 0xc0f   :  { %2107 = vrcp.f32 %v716_v26 }
 0xc15   :  { %v2108_v28 = vpop.eup %2107 }
 0xc16   :  { %v724_v30 = vmul.f32 %v2108_v28, %v2100_v8 }
 0xc18   :  { %v726_v49 = vpack.c.bf16 %v724_v30, %v723_v29 }
 0xc1a   :  { %1679 = vmatmul.msk.bf16.gmra.mxu3 %vm74_vm0, %v726_v49 }
 0xc8d   :  { %v748_v32 = vpop.f32.mrf.mxu3 }
 0xc95   :  { %v750_v33 = vpop.f32.mrf.mxu3 }
 0xc9d   :  { %v753_v50 = vpop.f32.mrf.mxu3 }
 0xca5   :  { %v755_v34 = vpop.f32.mrf.mxu3 }
 0xca6   :  { %v2020_v35 = vpack.i.bf16 %v755_v34, %v753_v50  ;;  %v1946_v50 = vld [vmem:[%s2804_s13 + $0x20] sm:$0xff] }
 0xca7   :  { %v2054_v34 = vld [vmem:[%s2803_s12 + $0x1] ss:$0 sm:$0xff] }
 0xca8   :  { %2021 = vrot.lane.b32.xlu0 %v2020_v35, %s2151_s28 }
 0xd1a   :  { %v2022_v37 = vpop.permute.xlu0 %2021 }
 0xd1b   :  { %v2024_v38 = vunpack.i.h.bf16 %v2022_v37  ;;  %v2023_v39 = vunpack.i.l.bf16 %v2022_v37 }
 0xd1d   :  { %v767_v40 = vsel %vm194_vm8, %v750_v33, %v2024_v38  ;;  %v766_v41 = vsel %vm194_vm8, %v748_v32, %v2023_v39  ;;  %v1948_v32 = vld [vmem:[%s2804_s13 + $0x30] sm:$0xff]  ;;  %v1947_v33 = vld [vmem:[%s2804_s13 + $0x28] sm:$0xff] }
 0xd1e   :  { %v768_v42 = vpack.c.bf16 %v767_v40, %v766_v41  ;;  %973 = vmatpush.bf16.msra.mxu1 %v1948_v32 }
 0xd20   :  { %1693 = vmatmul.msk.bf16.vlgmr.msrb.gmra.mxu1 %vm74_vm0, %v768_v42 }
 0xd22   :  { %974 = vmatpush.bf16.msra.mxu1 %v1947_v33 }
 0xd26   :  { %975 = vmatpush.bf16.msra.mxu1 %v1946_v50  ;;  %v2057_v50 = vld [vmem:[%s2807_s16 + $0x1] ss:$0 sm:$0xff]  ;;  %s2153_s16 = smov [#allocation2]  }
 0xd27   :  { %s1603_s28 = sshll.u32 %s2153_s16, 4  ;;  %s1604_s28 = int_to_ptr.vmem [resolvable:$true] %s1603_s28 }
 0xd9d   :  { %v803_v44 = vpop.f32.mrf.mxu1 }
 0xd9e   :  { %v804_v45 = vadd.f32 %v2051_v43, %v803_v44 }
 0xda0   :  { %v808_v46 = vadd.f32 %v804_v45, %v2420_v23 }
 0xda2   :  { %v814_v47 = vsel %vm74_vm0, %v808_v46, 0.0 }
 0xda3   :  { %815 = vadd.xlane.f32.xlu1 %v814_v47 }
 0xda5   :  { %v805_v48 = vpop.f32.mrf.mxu1 }
 0xda6   :  { %v806_v51 = vadd.f32 %v2051_v43, %v805_v48 }
 0xda8   :  { %v809_v52 = vadd.f32 %v806_v51, %v2422_v24  ;;  %v1945_v24 = vld [vmem:[%s2802_s11 + $0x18] sm:$0xff] }
 0xda9   :  { %900 = vmatpush.bf16.msrb.mxu0 %v1945_v24 }
 0xdaa   :  { %v817_v53 = vsel %vm74_vm0, %v809_v52, 0.0 }
 0xdab   :  { %818 = vadd.xlane.f32.xlu2 %v817_v53 }
 0xdad   :  { %901 = vmatpush.bf16.msrb.mxu0 %v1944_v62 }
 0xe16   :  { %v816_v54 = vpop.xlane.xlu1 %815 }
 0xe17   :  { %v820_v4 = vmul.f32 %v816_v54, %v2272_v10 }
 0xe19   :  { %v822_v55 = vsub.f32 %v808_v46, %v820_v4 }
 0xe1b   :  { %v824_v9 = vmul.f32 %v822_v55, %v822_v55 }
 0xe1d   :  { %v826_v56 = vsel %vm74_vm0, %v824_v9, 0.0 }
 0xe1e   :  { %v819_v57 = vpop.xlane.xlu2 %818  ;;  %827 = vadd.xlane.f32.xlu0 %v826_v56 }
 0xe1f   :  { %v821_v23 = vmul.f32 %v819_v57, %v2272_v10 }
 0xe21   :  { %v823_v58 = vsub.f32 %v809_v52, %v821_v23  ;;  %v2055_v23 = vld [vmem:[%s2805_s14 + $0x1] ss:$0 sm:$0xff] }
 0xe23   :  { %v825_v59 = vmul.f32 %v823_v58, %v823_v58 }
 0xe25   :  { %v829_v60 = vsel %vm74_vm0, %v825_v59, 0.0 }
 0xe26   :  { %830 = vadd.xlane.f32.xlu1 %v829_v60 }
 0xe91   :  { %v828_v15 = vpop.xlane.xlu0 %827 }
 0xe92   :  { %v832_v61 = vmul.f32 %v828_v15, %v2272_v10 }
 0xe94   :  { %v834_v63 = vadd.f32 1e-12, %v832_v61 }
 0xe96   :  { %2109 = vrsqrt.f32 %v834_v63  ;;  %vm842_vm8 = vweird.f32 %v834_v63 }
 0xe99   :  { %v831_v20 = vpop.xlane.xlu1 %830 }
 0xe9a   :  { %v833_v0 = vmul.f32 %v831_v20, %v2272_v10 }
 0xe9c   :  { %v2110_v1 = vpop.eup %2109  ;;  %v835_v2 = vadd.f32 1e-12, %v833_v0 }
 0xe9d   :  { %v837_v3 = vmul.f32 %v2110_v1, %v834_v63  ;;  %vm843_vm7 = vweird.f32 %v2110_v1 }
 0xe9e   :  { %2111 = vrsqrt.f32 %v835_v2  ;;  %vm844_vm9 = vmor %vm842_vm8, %vm843_vm7  ;;  %vm852_vm11 = vweird.f32 %v835_v2  ;;  %vm1044_vm7 = vcmask 1046528   ;;  %vm1087_vm8 = vcmask 785408  }
 0xe9f   :  { %v838_v5 = vmul.f32 %v2110_v1, %v837_v3 }
 0xea1   :  { %v839_v6 = vmul.f32 0.5, %v838_v5 }
 0xea3   :  { %v840_v7 = vsub.f32 1.5, %v839_v6 }
 0xea4   :  { %v2112_v8 = vpop.eup %2111 }
 0xea5   :  { %v841_v11 = vmul.f32 %v2110_v1, %v840_v7  ;;  %v847_v12 = vmul.f32 %v2112_v8, %v835_v2  ;;  %vm853_vm10 = vweird.f32 %v2112_v8 }
 0xea6   :  { %vm854_vm12 = vmor %vm852_vm11, %vm853_vm10 }
 0xea7   :  { %v848_v13 = vmul.f32 %v2112_v8, %v847_v12  ;;  %v845_v14 = vsel %vm844_vm9, %v2110_v1, %v841_v11 }
 0xea8   :  { %v856_v19 = vmul.f32 %v845_v14, %v822_v55 }
 0xea9   :  { %v849_v16 = vmul.f32 0.5, %v848_v13 }
 0xeaa   :  { %v861_v26 = vmul.f32 %v2052_v18, %v856_v19 }
 0xeab   :  { %v850_v17 = vsub.f32 1.5, %v849_v16 }
 0xeac   :  { %v866_v29 = vadd.f32 %v2053_v25, %v861_v26 }
 0xead   :  { %v851_v21 = vmul.f32 %v2112_v8, %v850_v17 }
 0xeaf   :  { %v855_v22 = vsel %vm854_vm12, %v2112_v8, %v851_v21 }
 0xeb0   :  { %v857_v27 = vmul.f32 %v855_v22, %v823_v58 }
 0xeb2   :  { %v862_v28 = vmul.f32 %v2052_v18, %v857_v27 }
 0xeb4   :  { %v867_v30 = vadd.f32 %v2053_v25, %v862_v28 }
 0xeb6   :  { %v868_v49 = vpack.c.bf16 %v867_v30, %v866_v29 }
 0xeb8   :  { %1709 = vmatmul.msk.bf16.vlgmr.msrb.gmra.mxu0 %vm74_vm0, %v868_v49 }
 0xf35   :  { %v903_v35 = vpop.f32.mrf.mxu0 }
 0xf36   :  { %v904_v36 = vadd.f32 %v2054_v34, %v903_v35 }
 0xf38   :  { %v910_v37 = vmul.f32 0.044715, %v904_v36  ;;  %v908_v54 = vmul.f32 0.5, %v904_v36 }
 0xf3a   :  { %v912_v38 = vmul.f32 %v910_v37, %v904_v36 }
 0xf3c   :  { %v914_v39 = vmul.f32 %v912_v38, %v904_v36 }
 0xf3d   :  { %v905_v40 = vpop.f32.mrf.mxu0 }
 0xf3e   :  { %v916_v41 = vadd.f32 %v914_v39, %v904_v36  ;;  %v906_v42 = vadd.f32 %v2054_v34, %v905_v40 }
 0xf40   :  { %v911_v43 = vmul.f32 0.044715, %v906_v42  ;;  %v918_v44 = vmul.f32 0.7978846, %v916_v41  ;;  %v909_v4 = vmul.f32 0.5, %v906_v42 }
 0xf42   :  { %v913_v45 = vmul.f32 %v911_v43, %v906_v42  ;;  %2113 = vtanh.f32 %v918_v44 }
 0xf44   :  { %v915_v46 = vmul.f32 %v913_v45, %v906_v42 }
 0xf46   :  { %v917_v47 = vadd.f32 %v915_v46, %v906_v42 }
 0xf48   :  { %v919_v48 = vmul.f32 0.7978846, %v917_v47  ;;  %v2114_v51 = vpop.eup %2113 }
 0xf49   :  { %v922_v52 = vadd.f32 1.0, %v2114_v51 }
 0xf4a   :  { %2115 = vtanh.f32 %v919_v48 }
 0xf4b   :  { %v924_v9 = vmul.f32 %v922_v52, %v908_v54 }
 0xf50   :  { %v2116_v53 = vpop.eup %2115 }
 0xf51   :  { %v923_v55 = vadd.f32 1.0, %v2116_v53 }
 0xf53   :  { %v925_v56 = vmul.f32 %v923_v55, %v909_v4 }
 0xf55   :  { %v926_v57 = vpack.c.bf16 %v925_v56, %v924_v9  ;;  %v1824_v56 = vld [vmem:[%s2808_s17 + $0xa8] sm:$0xf] }
 0xf57   :  { %1735 = vmatmul.msk.bf16.vlgmr.msra.gmra.mxu1 %vm510_vm15, %v926_v57  ;;  %v1972_v57 = vld [vmem:[%s2808_s17 + $0xb0] sm:$0xf0] }
 0xfd4   :  { %v977_v58 = vpop.f32.mrf.mxu1 }
 0xfd5   :  { %v978_v59 = vadd.f32 %v2055_v23, %v977_v58  ;;  %v1825_v58 = vor.u32 %v1972_v57, %v1824_v56  ;;  %v1740_v57 = vld [vmem:[%s2808_s17] sm:$0xf] }
 0xfd7   :  { %v982_v60 = vadd.f32 %v978_v59, %v866_v29  ;;  %v1826_v59 = vld [vmem:[%s2808_s17 + $0xb4] sm:$0xf0]  ;;  %1259 = vmatpush.bf16.msra.mxu2 %v1825_v58  ;;  %v1950_v58 = vld [vmem:[%s2808_s17 + $0x4] sm:$0xf] }
 0xfd9   :  { %v988_v24 = vsel %vm74_vm0, %v982_v60, 0.0 }
 0xfda   :  { %989 = vadd.xlane.f32.xlu2 %v988_v24  ;;  %v1973_v24 = vld [vmem:[%s2808_s17 + $0xb8] sm:$0xf0] }
 0xfdc   :  { %v979_v15 = vpop.f32.mrf.mxu1 }
 0xfdd   :  { %v980_v61 = vadd.f32 %v2055_v23, %v979_v15  ;;  %v1971_v23 = vld [vmem:[%s2808_s17 + $0xac] sm:$0xf] }
 0xfde   :  { %v1829_v15 = vor.u32 %v1971_v23, %v1826_v59  ;;  %v1951_v23 = vld [vmem:[%s2808_s17 + $0x8] sm:$0xf0] }
 0xfdf   :  { %v983_v62 = vadd.f32 %v980_v61, %v867_v30  ;;  %v1741_v59 = vor.u32 %v1951_v23, %v1740_v57  ;;  %v1308_v57 = vld [vmem:[%s2828_s27 + $0x8] sm:$0xff] }
 0xfe0   :  { %1273 = vmatpush.bf16.msrb.mxu3 %v1829_v15  ;;  %v1952_v15 = vld [vmem:[%s2808_s17 + $0x10] sm:$0xf0] }
 0xfe1   :  { %v991_v63 = vsel %vm74_vm0, %v983_v62, 0.0 }
 0xfe2   :  { %992 = vadd.xlane.f32.xlu1 %v991_v63  ;;  %v1969_v63 = vld [vmem:[%s2808_s17 + $0x98] sm:$0xf0] }
0x104d   :  { %v990_v20 = vpop.xlane.xlu2 %989 }
0x104e   :  { %v994_v0 = vmul.f32 %v990_v20, %v2272_v10  ;;  %v1968_v20 = vld [vmem:[%s2808_s17 + $0x94] sm:$0xf] }
0x1050   :  { %v996_v1 = vsub.f32 %v982_v60, %v994_v0  ;;  %v1832_v60 = vld [vmem:[%s2808_s17 + $0xb0] sm:$0xf] }
0x1051   :  { %v1833_v61 = vor.u32 %v1973_v24, %v1832_v60  ;;  %v1742_v60 = vld [vmem:[%s2808_s17 + $0xc] sm:$0xf0]  ;;  %v1748_v24 = vld [vmem:[%s2808_s17 + $0x8] sm:$0xf] }
0x1052   :  { %v998_v2 = vmul.f32 %v996_v1, %v996_v1 }
0x1053   :  { %1287 = vmatpush.bf16.msra.mxu0 %v1833_v61  ;;  %v1745_v61 = vor.u32 %v1950_v58, %v1742_v60 }
0x1054   :  { %v1000_v3 = vsel %vm74_vm0, %v998_v2, 0.0  ;;  %v1820_v2 = vld [vmem:[%s2808_s17 + $0x98] sm:$0xf] }
0x1055   :  { %v993_v5 = vpop.xlane.xlu1 %992  ;;  %1001 = vadd.xlane.f32.xlu2 %v1000_v3  ;;  %v1970_v3 = vld [vmem:[%s2808_s17 + $0xa0] sm:$0xf0] }
0x1056   :  { %v995_v6 = vmul.f32 %v993_v5, %v2272_v10 }
0x1058   :  { %v997_v7 = vsub.f32 %v983_v62, %v995_v6  ;;  %v1812_v62 = vld [vmem:[%s2808_s17 + $0x90] sm:$0xf]  ;;  %v1821_v6 = vor.u32 %v1970_v3, %v1820_v2 }
0x1059   :  { %v1813_v0 = vor.u32 %v1969_v63, %v1812_v62  ;;  %v1749_v62 = vor.u32 %v1952_v15, %v1748_v24  ;;  %v1997_v63 = vld [vmem:[%s2810_s19 + $0xb8] sm:$0xff] }
0x105a   :  { %v999_v8 = vmul.f32 %v997_v7, %v997_v7  ;;  %1288 = vmatpush.bf16.msra.mxu0 %v1821_v6 }
0x105b   :  { %1260 = vmatpush.bf16.msra.mxu2 %v1813_v0 }
0x105c   :  { %v1003_v11 = vsel %vm74_vm0, %v999_v8, 0.0  ;;  %v1966_v8 = vld [vmem:[%s2808_s17 + $0x80] sm:$0xf0] }
0x105d   :  { %1004 = vadd.xlane.f32.xlu1 %v1003_v11  ;;  %v1965_v11 = vld [vmem:[%s2808_s17 + $0x7c] sm:$0xf] }
0x10c8   :  { %v1002_v12 = vpop.xlane.xlu2 %1001 }
0x10c9   :  { %v1006_v13 = vmul.f32 %v1002_v12, %v2272_v10  ;;  %v1802_v12 = vld [vmem:[%s2808_s17 + $0x84] sm:$0xf0] }
0x10cb   :  { %v1008_v14 = vadd.f32 1e-12, %v1006_v13  ;;  %v1808_v13 = vld [vmem:[%s2808_s17 + $0x80] sm:$0xf] }
0x10cd   :  { %2117 = vrsqrt.f32 %v1008_v14  ;;  %vm1016_vm14 = vweird.f32 %v1008_v14 }
0x10d0   :  { %v1005_v16 = vpop.xlane.xlu1 %1004 }
0x10d1   :  { %v1007_v17 = vmul.f32 %v1005_v16, %v2272_v10 }
0x10d3   :  { %v2118_v18 = vpop.eup %2117  ;;  %v1009_v19 = vadd.f32 1e-12, %v1007_v17  ;;  %v1805_v17 = vor.u32 %v1965_v11, %v1802_v12 }
0x10d4   :  { %v1011_v21 = vmul.f32 %v2118_v18, %v1008_v14  ;;  %vm1017_vm13 = vweird.f32 %v2118_v18  ;;  %v1967_v14 = vld [vmem:[%s2808_s17 + $0x88] sm:$0xf0] }
0x10d5   :  { %2119 = vrsqrt.f32 %v1009_v19  ;;  %vm1018_vm1 = vmor %vm1016_vm14, %vm1017_vm13  ;;  %vm1026_vm3 = vweird.f32 %v1009_v19 }
0x10d6   :  { %v1012_v22 = vmul.f32 %v2118_v18, %v1011_v21  ;;  %v1963_v21 = vld [vmem:[%s2808_s17 + $0x68] sm:$0xf0] }
0x10d8   :  { %v1013_v25 = vmul.f32 0.5, %v1012_v22  ;;  %v1962_v22 = vld [vmem:[%s2808_s17 + $0x64] sm:$0xf] }
0x10da   :  { %v1014_v26 = vsub.f32 1.5, %v1013_v25  ;;  %v1790_v25 = vld [vmem:[%s2808_s17 + $0x6c] sm:$0xf0] }
0x10db   :  { %v2120_v27 = vpop.eup %2119 }
0x10dc   :  { %v1015_v28 = vmul.f32 %v2118_v18, %v1014_v26  ;;  %v1021_v29 = vmul.f32 %v2120_v27, %v1009_v19  ;;  %vm1027_vm2 = vweird.f32 %v2120_v27  ;;  %v1788_v19 = vld [vmem:[%s2808_s17 + $0x60] sm:$0xf]  ;;  %v1796_v26 = vld [vmem:[%s2808_s17 + $0x68] sm:$0xf] }
0x10dd   :  { %vm1028_vm4 = vmor %vm1026_vm3, %vm1027_vm2 }
0x10de   :  { %v1019_v30 = vsel %vm1018_vm1, %v2118_v18, %v1015_v28  ;;  %v1022_v49 = vmul.f32 %v2120_v27, %v1021_v29  ;;  %v1809_v18 = vor.u32 %v1967_v14, %v1808_v13  ;;  %v1789_v28 = vor.u32 %v1963_v21, %v1788_v19  ;;  %v1996_v19 = vld [vmem:[%s2810_s19 + $0xb0] sm:$0xff]  ;;  %v1995_v21 = vld [vmem:[%s2810_s19 + $0xa8] sm:$0xff] }
0x10df   :  { %v1030_v10 = vmul.f32 %v1019_v30, %v996_v1  ;;  %v1814_v1 = vld [vmem:[%s2808_s17 + $0x9c] sm:$0xf0]  ;;  %v1793_v29 = vor.u32 %v1962_v22, %v1790_v25  ;;  %v1980_v22 = vld [vmem:[%s2810_s19 + $0x30] sm:$0xff] }
0x10e0   :  { %v1023_v32 = vmul.f32 0.5, %v1022_v49  ;;  %v1817_v5 = vor.u32 %v1968_v20, %v1814_v1  ;;  %1289 = vmatpush.bf16.msra.mxu0 %v1809_v18  ;;  %v1776_v49 = vld [vmem:[%s2808_s17 + $0x48] sm:$0xf]  ;;  %v1988_v25 = vld [vmem:[%s2810_s19 + $0x70] sm:$0xff] }
0x10e1   :  { %v1035_v34 = vmul.f32 %v2056_v31, %v1030_v10  ;;  %v1959_v10 = vld [vmem:[%s2808_s17 + $0x4c] sm:$0xf] }
0x10e2   :  { %v1024_v33 = vsub.f32 1.5, %v1023_v32  ;;  %1274 = vmatpush.bf16.msrb.mxu3 %v1817_v5  ;;  %v1778_v32 = vld [vmem:[%s2808_s17 + $0x54] sm:$0xf0] }
0x10e3   :  { %v2527_v38 = vadd.f32 %v2057_v50, %v1035_v34 }
0x10e4   :  { %v1025_v35 = vmul.f32 %v2120_v27, %v1024_v33  ;;  %v1784_v33 = vld [vmem:[%s2808_s17 + $0x50] sm:$0xf] }
0x10e5   :  { %v1057_v41 = vrot.slane %v2527_v38, 3  ;;  %v1051_v43 = vrot.slane %v2527_v38, 2  ;;  %v1045_v46 = vrot.slane %v2527_v38, 1 }
0x10e6   :  { %v1029_v36 = vsel %vm1028_vm4, %v2120_v27, %v1025_v35  ;;  %v1964_v27 = vld [vmem:[%s2808_s17 + $0x70] sm:$0xf0]  ;;  %1275 = vmatpush.bf16.msrb.mxu3 %v1805_v17  ;;  %v1781_v35 = vor.u32 %v1959_v10, %v1778_v32  ;;  %v1977_v10 = vld [vmem:[%s2810_s19 + $0x18] sm:$0xff] }
0x10e7   :  { %v1031_v37 = vmul.f32 %v1029_v36, %v997_v7  ;;  %v1800_v7 = vld [vmem:[%s2808_s17 + $0x78] sm:$0xf]  ;;  %v1797_v30 = vor.u32 %v1964_v27, %v1796_v26  ;;  %v1994_v26 = vld [vmem:[%s2810_s19 + $0xa0] sm:$0xff]  ;;  %v1979_v27 = vld [vmem:[%s2810_s19 + $0x28] sm:$0xff] }
0x10e8   :  { %v1801_v16 = vor.u32 %v1966_v8, %v1800_v7  ;;  %v1985_v32 = vld [vmem:[%s2810_s19 + $0x58] sm:$0xff] }
0x10e9   :  { %v1036_v39 = vmul.f32 %v2056_v31, %v1031_v37  ;;  %v1960_v31 = vld [vmem:[%s2808_s17 + $0x50] sm:$0xf0]  ;;  %1290 = vmatpush.bf16.msra.mxu0 %v1797_v30  ;;  %v1764_v37 = vld [vmem:[%s2808_s17 + $0x30] sm:$0xf]  ;;  %v1978_v30 = vld [vmem:[%s2810_s19 + $0x20] sm:$0xff] }
0x10ea   :  { %1261 = vmatpush.bf16.msra.mxu2 %v1801_v16  ;;  %v1777_v34 = vor.u32 %v1960_v31, %v1776_v49  ;;  %1276 = vmatpush.bf16.msrb.mxu3 %v1793_v29  ;;  %v1993_v29 = vld [vmem:[%s2810_s19 + $0x98] sm:$0xff]  ;;  %v1986_v49 = vld [vmem:[%s2810_s19 + $0x60] sm:$0xff]  ;;  %v1992_v31 = vld [vmem:[%s2810_s19 + $0x90] sm:$0xff] }
0x10eb   :  { %v2529_v40 = vadd.f32 %v2057_v50, %v1036_v39  ;;  %v1961_v50 = vld [vmem:[%s2808_s17 + $0x58] sm:$0xf0] }
0x10ec   :  { %v1785_v36 = vor.u32 %v1961_v50, %v1784_v33  ;;  %v1957_v39 = vld [vmem:[%s2808_s17 + $0x38] sm:$0xf0]  ;;  %v1991_v33 = vld [vmem:[%s2810_s19 + $0x88] sm:$0xff]  ;;  %v1976_v50 = vld [vmem:[%s2810_s19 + $0x10] sm:$0xff] }
0x10ed   :  { %v1058_v42 = vrot.slane %v2529_v40, 3  ;;  %v1052_v44 = vrot.slane %v2529_v40, 2  ;;  %v1046_v45 = vrot.slane %v2529_v40, 1 }
0x10ee   :  { %1262 = vmatpush.bf16.msra.mxu2 %v1789_v28  ;;  %1277 = vmatpush.bf16.msrb.mxu3 %v1781_v35  ;;  %v1987_v28 = vld [vmem:[%s2810_s19 + $0x68] sm:$0xff]  ;;  %v1990_v35 = vld [vmem:[%s2810_s19 + $0x80] sm:$0xff] }
0x10ef   :  { %v1059_v47 = vsel %vm1056_vm5, %v1057_v41, %v1058_v42  ;;  %v1061_v48 = vsel %vm1056_vm5, %v1058_v42, 0.0  ;;  %v1053_v51 = vsel %vm1050_vm6, %v1051_v43, %v1052_v44  ;;  %v1055_v52 = vsel %vm1050_vm6, %v1052_v44, 0.0  ;;  %v1956_v41 = vld [vmem:[%s2808_s17 + $0x34] sm:$0xf]  ;;  %v1766_v42 = vld [vmem:[%s2808_s17 + $0x3c] sm:$0xf0]  ;;  %1291 = vmatpush.bf16.msra.mxu0 %v1785_v36 }
0x10f0   :  { %v2035_v53 = vpack.i.bf16 %v1061_v48, %v1059_v47  ;;  %v2030_v54 = vpack.i.bf16 %v1055_v52, %v1053_v51  ;;  %v1047_v4 = vsel %vm1044_vm7, %v1045_v46, %v1046_v45  ;;  %v1049_v55 = vsel %vm1044_vm7, %v1046_v45, 0.0  ;;  %v1772_v43 = vld [vmem:[%s2808_s17 + $0x38] sm:$0xf]  ;;  %v1958_v44 = vld [vmem:[%s2808_s17 + $0x40] sm:$0xf0] }
0x10f1   :  { %v2025_v9 = vpack.i.bf16 %v1049_v55, %v1047_v4  ;;  %v1765_v45 = vor.u32 %v1957_v39, %v1764_v37  ;;  %v1769_v46 = vor.u32 %v1956_v41, %v1766_v42  ;;  %v1773_v47 = vor.u32 %v1958_v44, %v1772_v43  ;;  %v1752_v48 = vld [vmem:[%s2808_s17 + $0x18] sm:$0xf]  ;;  %v1954_v51 = vld [vmem:[%s2808_s17 + $0x20] sm:$0xf0]  ;;  %v1953_v52 = vld [vmem:[%s2808_s17 + $0x1c] sm:$0xf] }
0x10f2   :  { %2036 = vrot.lane.b32.xlu1 %v2035_v53, %s2149_s3  ;;  %2031 = vrot.lane.b32.xlu2 %v2030_v54, %s2150_s2  ;;  %v1753_v53 = vor.u32 %v1954_v51, %v1752_v48  ;;  %v1754_v54 = vld [vmem:[%s2808_s17 + $0x24] sm:$0xf0]  ;;  %v1760_v4 = vld [vmem:[%s2808_s17 + $0x20] sm:$0xf] }
0x10f3   :  { %2026 = vrot.lane.b32.xlu0 %v2025_v9, %s2152_s15  ;;  %1263 = vmatpush.bf16.msra.mxu2 %v1777_v34  ;;  %v1955_v55 = vld [vmem:[%s2808_s17 + $0x28] sm:$0xf0]  ;;  %v1757_v9 = vor.u32 %v1953_v52, %v1754_v54  ;;  %v1984_v34 = vld [vmem:[%s2810_s19 + $0x50] sm:$0xff]  ;;  %v1123_v36 = vld [vmem:[%s2809_s18] sm:$0x7] }
0x10f4   :  { %1278 = vmatpush.bf16.msrb.mxu3 %v1769_v46  ;;  %1292 = vmatpush.bf16.msra.mxu0 %v1773_v47  ;;  %v1761_v56 = vor.u32 %v1955_v55, %v1760_v4  ;;  %v1975_v37 = vld [vmem:[%s2810_s19 + $0x8] sm:$0xff]  ;;  %v1127_v41 = vperm.slane %v1123_v36, 2  ;;  %v1974_v42 = vld [vmem:[%s2810_s19] sm:$0xff]  ;;  %v1309_v46 = vld [vmem:[%s2828_s27 + $0x10] sm:$0xff]  ;;  %v1125_v47 = vperm.slane %v1123_v36, 0  ;;  %v1126_v48 = vperm.slane %v1123_v36, 1 }
0x10f5   :  { %v1983_v39 = vld [vmem:[%s2810_s19 + $0x48] sm:$0xff]  ;;  %v1982_v43 = vld [vmem:[%s2810_s19 + $0x40] sm:$0xff] }
0x10f7   :  { %1264 = vmatpush.bf16.msra.mxu2 %v1765_v45 }
0x10f8   :  { %1279 = vmatpush.bf16.msrb.mxu3 %v1757_v9  ;;  %1293 = vmatpush.bf16.msra.mxu0 %v1761_v56  ;;  %v1307_v56 = vld [vmem:[%s2828_s27] sm:$0xff] }
0x10fb   :  { %1265 = vmatpush.bf16.msra.mxu2 %v1753_v53 }
0x10fc   :  { %1280 = vmatpush.bf16.msrb.mxu3 %v1745_v61  ;;  %1294 = vmatpush.bf16.msra.mxu0 %v1749_v62  ;;  %v1312_v62 = vld [vmem:[%s2828_s27 + $0x28] sm:$0xff] }
0x10ff   :  { %1266 = vmatpush.bf16.msra.mxu2 %v1741_v59 }
0x1100   :  { %1584 = vmatpush.bf16.msra.mxu3 %v1997_v63 }
0x1104   :  { %1585 = vmatpush.bf16.msra.mxu3 %v1996_v19 }
0x1108   :  { %1586 = vmatpush.bf16.msra.mxu3 %v1995_v21 }
0x110c   :  { %1587 = vmatpush.bf16.msra.mxu3 %v1994_v26 }
0x1110   :  { %1588 = vmatpush.bf16.msra.mxu3 %v1993_v29 }
0x1114   :  { %1589 = vmatpush.bf16.msra.mxu3 %v1992_v31 }
0x1118   :  { %1590 = vmatpush.bf16.msra.mxu3 %v1991_v33 }
0x111c   :  { %1591 = vmatpush.bf16.msra.mxu3 %v1990_v35 }
0x114c   :  { %v2032_v20 = vpop.permute.xlu2 %2031 }
0x114d   :  { %v2034_v5 = vunpack.i.h.bf16 %v2032_v20  ;;  %v2033_v6 = vunpack.i.l.bf16 %v2032_v20 }
0x1164   :  { %v2037_v0 = vpop.permute.xlu1 %2036 }
0x1165   :  { %v2027_v1 = vpop.permute.xlu0 %2026  ;;  %v2039_v7 = vunpack.i.h.bf16 %v2037_v0  ;;  %v2038_v8 = vunpack.i.l.bf16 %v2037_v0 }
0x1166   :  { %v2029_v2 = vunpack.i.h.bf16 %v2027_v1  ;;  %v2028_v3 = vunpack.i.l.bf16 %v2027_v1 }
0x1168   :  { %v1084_v11 = vsel %vm74_vm0, %v2529_v40, %v2029_v2  ;;  %v1083_v12 = vsel %vm74_vm0, %v2527_v38, %v2028_v3  ;;  %v1981_v40 = vld [vmem:[%s2810_s19 + $0x38] sm:$0xff]  ;;  %vm1355_vm0 = vcmask 1040384  }
0x1169   :  { %v1086_v13 = vsel %vm510_vm15, %v1084_v11, %v2034_v5  ;;  %v1085_v14 = vsel %vm510_vm15, %v1083_v12, %v2033_v6  ;;  %v1989_v38 = vld [vmem:[%s2810_s19 + $0x78] sm:$0xff]  ;;  %1558 = vmatpush.bf16.msrb.mxu1 %v1981_v40 }
0x116a   :  { %v1088_v16 = vsel %vm1087_vm8, %v1085_v14, %v2038_v8  ;;  %v1089_v17 = vsel %vm1087_vm8, %v1086_v13, %v2039_v7  ;;  %1571 = vmatpush.bf16.msrb.mxu2 %v1989_v38  ;;  %v1310_v13 = vld [vmem:[%s2828_s27 + $0x18] sm:$0xff]  ;;  %v1311_v14 = vld [vmem:[%s2828_s27 + $0x20] sm:$0xff] }
0x116b   :  { %v1090_v18 = vpack.c.bf16 %v1089_v17, %v1088_v16 }
0x116d   :  { %1267 = vmatmul.bf16.vlgmr.msra.gmra.mxu2 %v1090_v18  ;;  %1281 = vmatmul.bf16.vlgmr.msrb.gmra.mxu3 %v1090_v18 }
0x116e   :  { %1295 = vmatmul.bf16.vlgmr.msra.gmra.mxu0 %v1090_v18  ;;  %1559 = vmatpush.bf16.msrb.mxu1 %v1980_v22 }
0x116f   :  { %1572 = vmatpush.bf16.msrb.mxu2 %v1988_v25 }
0x1172   :  { %1560 = vmatpush.bf16.msrb.mxu1 %v1979_v27 }
0x1173   :  { %1573 = vmatpush.bf16.msrb.mxu2 %v1987_v28 }
0x1176   :  { %1561 = vmatpush.bf16.msrb.mxu1 %v1978_v30 }
0x1177   :  { %1574 = vmatpush.bf16.msrb.mxu2 %v1986_v49 }
0x117a   :  { %1562 = vmatpush.bf16.msrb.mxu1 %v1977_v10 }
0x117b   :  { %1575 = vmatpush.bf16.msrb.mxu2 %v1985_v32 }
0x117e   :  { %1563 = vmatpush.bf16.msrb.mxu1 %v1976_v50 }
0x117f   :  { %1576 = vmatpush.bf16.msrb.mxu2 %v1984_v34 }
0x1182   :  { %1564 = vmatpush.bf16.msrb.mxu1 %v1975_v37 }
0x1183   :  { %1577 = vmatpush.bf16.msrb.mxu2 %v1983_v39 }
0x1186   :  { %1565 = vmatpush.bf16.msrb.mxu1 %v1974_v42 }
0x1187   :  { %1578 = vmatpush.bf16.msrb.mxu2 %v1982_v43 }
0x11eb   :  { %v1296_v44 = vpop.f32.mrf.mxu0 }
0x11ec   :  { %v1297_v45 = vadd.f32 %v1296_v44, %v1127_v41 }
0x11ee   :  { %v1303_v51 = vmax.f32 %v1297_v45, 0.0 }
0x11f0   :  { %v1315_v52 = vmul.f32 %v1309_v46, %v1303_v51  ;;  %v1268_v53 = vpop.f32.mrf.mxu2  ;;  %v1282_v54 = vpop.f32.mrf.mxu3 }
0x11f1   :  { %v1269_v4 = vadd.f32 %v1268_v53, %v1125_v47  ;;  %v1283_v55 = vadd.f32 %v1282_v54, %v1126_v48 }
0x11f2   :  { %v1331_v9 = vrot.slane %v1315_v52, 4 }
0x11f3   :  { %v1301_v23 = vmax.f32 %v1269_v4, 0.0  ;;  %v1302_v58 = vmax.f32 %v1283_v55, 0.0  ;;  %v1298_v59 = vpop.f32.mrf.mxu0 }
0x11f4   :  { %v1332_v60 = vmax.f32 %v1315_v52, %v1331_v9  ;;  %v1299_v24 = vadd.f32 %v1298_v59, %v1127_v41  ;;  %v2058_v9 = vld [vmem:[%s2811_s20] ss:$0 sm:$0xff] }
0x11f5   :  { %v1313_v15 = vmul.f32 %v1307_v56, %v1301_v23  ;;  %v1314_v61 = vmul.f32 %v1308_v57, %v1302_v58 }
0x11f6   :  { %v1306_v63 = vmax.f32 %v1299_v24, 0.0  ;;  %v1333_v1 = vrot.slane %v1332_v60, 2 }
0x11f7   :  { %v1319_v20 = vrot.slane %v1313_v15, 4  ;;  %v1325_v0 = vrot.slane %v1314_v61, 4 }
0x11f8   :  { %v1318_v2 = vmul.f32 %v1312_v62, %v1306_v63  ;;  %v1270_v3 = vpop.f32.mrf.mxu2  ;;  %v1284_v5 = vpop.f32.mrf.mxu3  ;;  %v1334_v18 = vmax.f32 %v1332_v60, %v1333_v1 }
0x11f9   :  { %v1320_v6 = vmax.f32 %v1313_v15, %v1319_v20  ;;  %v1326_v7 = vmax.f32 %v1314_v61, %v1325_v0  ;;  %v1271_v8 = vadd.f32 %v1270_v3, %v1125_v47  ;;  %v1285_v11 = vadd.f32 %v1284_v5, %v1126_v48 }
0x11fa   :  { %v1349_v12 = vrot.slane %v1318_v2, 4  ;;  %v1335_v28 = vrot.slane %v1334_v18, 1 }
0x11fb   :  { %v1304_v16 = vmax.f32 %v1271_v8, 0.0  ;;  %v1305_v17 = vmax.f32 %v1285_v11, 0.0  ;;  %v1321_v40 = vrot.slane %v1320_v6, 2  ;;  %v1327_v38 = vrot.slane %v1326_v7, 2 }
0x11fc   :  { %v1350_v19 = vmax.f32 %v1318_v2, %v1349_v12  ;;  %v1336_v34 = vmax.f32 %v1334_v18, %v1335_v28 }
0x11fd   :  { %v1316_v21 = vmul.f32 %v1310_v13, %v1304_v16  ;;  %v1317_v22 = vmul.f32 %v1311_v14, %v1305_v17  ;;  %v1322_v30 = vmax.f32 %v1320_v6, %v1321_v40  ;;  %v1328_v49 = vmax.f32 %v1326_v7, %v1327_v38 }
0x11fe   :  { %v1351_v25 = vrot.slane %v1350_v19, 2 }
0x11ff   :  { %v1337_v26 = vrot.slane %v1316_v21, 4  ;;  %v1343_v27 = vrot.slane %v1317_v22, 4  ;;  %v1323_v36 = vrot.slane %v1322_v30, 1  ;;  %v1329_v37 = vrot.slane %v1328_v49, 1 }
0x1200   :  { %v1352_v29 = vmax.f32 %v1350_v19, %v1351_v25 }
0x1201   :  { %v1338_v31 = vmax.f32 %v1316_v21, %v1337_v26  ;;  %v1344_v10 = vmax.f32 %v1317_v22, %v1343_v27  ;;  %v1324_v46 = vmax.f32 %v1322_v30, %v1323_v36  ;;  %v1330_v47 = vmax.f32 %v1328_v49, %v1329_v37 }
0x1202   :  { %v1353_v32 = vrot.slane %v1352_v29, 1 }
0x1203   :  { %v1339_v33 = vrot.slane %v1338_v31, 2  ;;  %v1345_v50 = vrot.slane %v1344_v10, 2 }
0x1204   :  { %v1354_v35 = vmax.f32 %v1352_v29, %v1353_v32 }
0x1205   :  { %v1340_v39 = vmax.f32 %v1338_v31, %v1339_v33  ;;  %v1346_v41 = vmax.f32 %v1344_v10, %v1345_v50 }
0x1206   :  { %v1358_v42 = vsel %vm1355_vm0, %v1336_v34, %v1354_v35 }
0x1207   :  { %v1341_v43 = vrot.slane %v1340_v39, 1  ;;  %v1347_v44 = vrot.slane %v1346_v41, 1  ;;  %v1361_v45 = vpack.c.bf16 %v1358_v42, %v1358_v42 }
0x1209   :  { %v1342_v48 = vmax.f32 %v1340_v39, %v1341_v43  ;;  %v1348_v51 = vmax.f32 %v1346_v41, %v1347_v44  ;;  %1592 = vmatmul.bf16.vlgmr.msra.gmra.mxu3 %v1361_v45 }
0x120b   :  { %v1356_v52 = vsel %vm1355_vm0, %v1324_v46, %v1342_v48  ;;  %v1357_v53 = vsel %vm1355_vm0, %v1330_v47, %v1348_v51 }
0x120c   :  { %v1359_v54 = vpack.c.bf16 %v1356_v52, %v1356_v52  ;;  %v1360_v4 = vpack.c.bf16 %v1357_v53, %v1357_v53 }
0x120e   :  { %1566 = vmatmul.bf16.vlgmr.msrb.gmra.mxu1 %v1359_v54  ;;  %1579 = vmatmul.bf16.vlgmr.msrb.gmra.mxu2 %v1360_v4 }
0x128b   :  { %v1567_v55 = vpop.f32.mrf.mxu1 }
0x128c   :  { %v1593_v56 = vpop.f32.mrf.mxu3  ;;  %v1568_v57 = vadd.f32 %v2058_v9, %v1567_v55 }
0x1291   :  { %v1580_v23 = vpop.f32.mrf.mxu2 }
0x1292   :  { %v1581_v58 = vadd.f32 %v1580_v23, %v1568_v57 }
0x1293   :  { %v1569_v59 = vpop.f32.mrf.mxu1 }
0x1294   :  { %v1594_v60 = vadd.f32 %v1593_v56, %v1581_v58  ;;  %v1595_v24 = vpop.f32.mrf.mxu3 }
0x1296   :  { %1597 = vst [vmem:[#allocation2] sm:$0x3] %v1594_v60 }
0x1297   :  { %1608 = dma.vmem_to_hbm [thread:$0]  %s1604_s28, 32, %s1606_s0, [#allocation3]  }
0x1299   :  { %v1582_v15 = vpop.f32.mrf.mxu2 }
0x129a   :  { %2145 = dma.done.wait [#allocation3], 32  }
0x129b   :  { %2146 = vsyncadd [#allocation3], 4294967264 }
0x129c   :  { %1613 = vsyncpa [#allocation3], 1 }

</bundles_post_ra>
